<compile_context>
chip_gen: v6e
topology: v6e:2x2x1
jax: 0.10.0
libtpu: 0.0.40
codegen_flags: <defaults>
</compile_context>

<pallas_src>
import functools

import jax
import jax.numpy as jnp
from jax import lax
from jax.experimental import pallas as pl
from jax.experimental.pallas import tpu as pltpu

POOL_K = 3  # TODO(synk): alexnet_big.AlexNetBigEmoNet's maxpool config is not given;
POOL_S = 2  #             assuming AlexNet-style nn.MaxPool2d(kernel_size=3, stride=2).
LANE = 128
BT_MAX = 128           # batch rows per grid step (tunable; >=128 fills the MXU M dim).
MXU_PRECISION = None   # single-pass MXU matmul (bf16 inputs, f32 accumulation); error
                       # ~2^-8 relative on inputs, fine for this inference head.  Set
                       # to jax.lax.Precision.HIGHEST for bit-parity with f32 torch.


# -------------------- fused relu + maxpool + fc1 + fc2 + fc3 kernel --------------------
def _fused_kernel(x_ref, w1_ref, b1_ref, w2_ref, b2_ref, w3_ref, b3_ref, o_ref,
                  *, Ho, Wo):
    # x_ref: (BT, H, W, C) channels-last input tile (lane dim = C).
    x = x_ref[...]
    BT, _, W, _ = x.shape
    D1P = w1_ref.shape[-1]

    # ReLU + 3x3/s2 max-pool + fc1, fused: for every pooled position (h, w) contract
    # the (BT, C) channel slab against the matching (C, D1P) slice of the re-laid-out
    # fc1 weight.  No flattened activation is materialized, so no masked narrow stores.
    acc = jnp.zeros((BT, D1P), jnp.float32)
    for h in range(Ho):
        rows = x[:, POOL_S * h:POOL_S * h + POOL_K, :, :]                 # (BT, 3, W, C)
        mh = jnp.maximum(jnp.maximum(rows[:, 0], rows[:, 1]), rows[:, 2])  # (BT, W, C)
        # All W-2 window starts via unit-stride sublane slices; only even starts are
        # read below (computing only even starts would need strided relayouts).
        mw = jnp.maximum(jnp.maximum(mh[:, 0:W - 2, :], mh[:, 1:W - 1, :]),
                         mh[:, 2:W, :])                                    # (BT, W-2, C)
        pooled_h = jnp.maximum(mw, 0.0)          # ReLU commutes with max-pool.
        for w in range(Wo):
            vec = pooled_h[:, POOL_S * w, :]                               # (BT, C)
            acc = acc + jnp.dot(vec, w1_ref[h * Wo + w],
                                preferred_element_type=jnp.float32,
                                precision=MXU_PRECISION)

    h1 = jnp.maximum(acc + b1_ref[...], 0.0)
    h2 = jnp.maximum(jnp.dot(h1, w2_ref[...], preferred_element_type=jnp.float32,
                             precision=MXU_PRECISION) + b2_ref[...], 0.0)
    out = jnp.dot(h2, w3_ref[...], preferred_element_type=jnp.float32,
                  precision=MXU_PRECISION) + b3_ref[...]
    o_ref[...] = out.astype(o_ref.dtype)


# ------------------------------------- wrapper --------------------------------------
def _round_up(n, m):
    return ((n + m - 1) // m) * m


def _pick_bt(B, bt_max=BT_MAX):
    bt = min(B, bt_max)
    while B % bt:            # largest divisor of B that is <= bt_max
        bt -= 1
    # v7x has 2 TensorCores: give the "parallel" batch axis >=2 grid steps to shard
    # across them, as long as each step still keeps >=8 MXU rows.
    if B // bt < 2 and bt % 2 == 0 and bt >= 16:
        bt //= 2
    return bt


@jax.jit
def model_part_forward(x, w1, b1, w2, b2, w3, b3):
    B, C, H, W = x.shape
    assert H >= POOL_K and W >= POOL_K
    Ho = (H - POOL_K) // POOL_S + 1
    Wo = (W - POOL_K) // POOL_S + 1
    F = C * Wo * Ho
    D1, D2, K = w1.shape[0], w2.shape[0], w3.shape[0]
    assert w1.shape == (D1, F) and w2.shape == (D2, D1) and w3.shape == (K, D2)

    # Channels-last so the lane dim is C and pooling needs no strided vector ops.
    # TODO(synk): fold this transpose into the upstream conv's output layout to avoid
    #             one extra HBM pass over the activation.
    x_cl = jnp.transpose(x, (0, 2, 3, 1))                          # (B, H, W, C)

    D1P = _round_up(D1, LANE)
    D2P = _round_up(D2, LANE)
    KP = _round_up(K, LANE)

    # fc1 weight relayout: row f = (c*Wo + w)*Ho + h of w1^T -> w1g[h*Wo + w, c, :].
    # This absorbs PyTorch's permute(0,1,3,2).reshape flatten order into the weight.
    w1g = w1.T.reshape(C, Wo, Ho, D1).transpose(2, 1, 0, 3)        # (Ho, Wo, C, D1)
    w1g = jnp.pad(w1g, ((0, 0), (0, 0), (0, 0), (0, D1P - D1))).reshape(Ho * Wo, C, D1P)
    b1p = jnp.pad(b1, (0, D1P - D1)).reshape(1, D1P)
    w2t = jnp.pad(w2.T, ((0, D1P - D1), (0, D2P - D2)))            # (D1P, D2P)
    b2p = jnp.pad(b2, (0, D2P - D2)).reshape(1, D2P)
    w3t = jnp.pad(w3.T, ((0, D2P - D2), (0, KP - K)))              # (D2P, KP)
    b3p = jnp.pad(b3, (0, KP - K)).reshape(1, KP)
    # TODO(synk): for production AlexNetBig sizes (fc1 ~ 4096x9216) cast the fc weights
    #             to bf16 and tile fc1 over (F, D1) with a VMEM f32 accumulator
    #             (innermost "arbitrary" reduction axis, pl.when init/finalize); a
    #             resident f32 fc1 weight does not fit v7x's 64 MiB VMEM.

    BT = _pick_bt(B)
    grid = (B // BT,)

    def _resident(shape):
        # Grid-invariant operand: keep resident and single-buffered (halves its VMEM
        # footprint vs the default double-buffering).
        return pl.BlockSpec(shape, lambda i, _n=len(shape): (0,) * _n,
                            pipeline_mode=pl.Buffered(1))

    # Explicit VMEM budget: double-buffered activation/output tiles + resident weights
    # + headroom for the fc1 accumulator and compiler scratch.  Capped at v7x's 64 MiB
    # physical VMEM (v5e/v6e have 128 MiB; default scoped limits are only 16/32 MiB).
    vmem_bytes = 4 * (2 * BT * H * W * C + 2 * BT * KP
                      + Ho * Wo * C * D1P + D1P * D2P + D2P * KP
                      + D1P + D2P + KP + BT * (D1P + D2P))
    vmem_limit = int(min(max(2 * vmem_bytes + (4 << 20), 32 << 20), 64 << 20))

    kern = functools.partial(_fused_kernel, Ho=Ho, Wo=Wo)
    out = pl.pallas_call(
        kern,
        out_shape=jax.ShapeDtypeStruct((B, KP), x.dtype),
        grid=grid,
        in_specs=[
            pl.BlockSpec((BT, H, W, C), lambda i: (i, 0, 0, 0)),
            _resident((Ho * Wo, C, D1P)),
            _resident((1, D1P)),
            _resident((D1P, D2P)),
            _resident((1, D2P)),
            _resident((D2P, KP)),
            _resident((1, KP)),
        ],
        out_specs=pl.BlockSpec((BT, KP), lambda i: (i, 0)),
        compiler_params=pltpu.CompilerParams(
            dimension_semantics=("parallel",),
            vmem_limit_bytes=vmem_limit),
    )(x_cl, w1g, b1p, w2t, b2p, w3t, b3p)
    return out[:, :K]


# ------------------------------------ reference -------------------------------------
def reference_forward(x, w1, b1, w2, b2, w3, b3):
    B = x.shape[0]
    xr = jnp.maximum(x, 0.0)
    pooled = lax.reduce_window(xr, -jnp.inf, lax.max,
                               (1, 1, POOL_K, POOL_K), (1, 1, POOL_S, POOL_S), "VALID")
    flat = jnp.transpose(pooled, (0, 1, 3, 2)).reshape(B, -1)
    prec = lax.Precision.HIGHEST
    h = jnp.maximum(jnp.dot(flat, w1.T, precision=prec) + b1, 0.0)
    h = jnp.maximum(jnp.dot(h, w2.T, precision=prec) + b2, 0.0)
    return jnp.dot(h, w3.T, precision=prec) + b3


def _make_case(key, B, C, H, W, D1, D2, K):
    Ho = (H - POOL_K) // POOL_S + 1
    Wo = (W - POOL_K) // POOL_S + 1
    F = C * Wo * Ho
    keys = jax.random.split(key, 7)
    x = jax.random.normal(keys[0], (B, C, H, W), jnp.float32)
    w1 = 0.05 * jax.random.normal(keys[1], (D1, F), jnp.float32)
    b1 = 0.01 * jax.random.normal(keys[2], (D1,), jnp.float32)
    w2 = 0.05 * jax.random.normal(keys[3], (D2, D1), jnp.float32)
    b2 = 0.01 * jax.random.normal(keys[4], (D2,), jnp.float32)
    w3 = 0.05 * jax.random.normal(keys[5], (K, D2), jnp.float32)
    b3 = 0.01 * jax.random.normal(keys[6], (K,), jnp.float32)
    return x, w1, b1, w2, b2, w3, b3


if __name__ == "__main__":
    k1, k2 = jax.random.split(jax.random.PRNGKey(0))
    # 16x16: the small test shape; 13x13: AlexNet-style odd pooled-input size
    # (exercises the odd-H/W path the previous version could not handle).
    for case_key, (B, C, H, W) in ((k1, (2, 4, 16, 16)), (k2, (2, 4, 13, 13))):
        args = _make_case(case_key, B, C, H, W, 64, 32, 20)
        out = jax.block_until_ready(model_part_forward(*args))
        ref = reference_forward(*args)
        assert out.shape == ref.shape == (B, 20)
        # Kernel dots use the MXU's native single-pass precision (bf16 inputs, f32
        # accumulation, ~2^-8 relative input rounding); the reference uses full-f32
        # HIGHEST, so the tolerance is sized for that quantization.
        assert jnp.allclose(out, ref, rtol=2e-2, atol=2e-2), "mismatch vs reference"
    print("KERNEL_OK")
</pallas_src>

<mosaic_0001>
module attributes {stable_mosaic.version = 11 : i64} {
  func.func @_fused_kernel(%arg0: i32, %arg1: memref<2x16x16x4xf32, #tpu.memory_space<vmem>>, %arg2: memref<49x4x128xf32, #tpu.memory_space<vmem>>, %arg3: memref<1x128xf32, #tpu.memory_space<vmem>>, %arg4: memref<128x128xf32, #tpu.memory_space<vmem>>, %arg5: memref<1x128xf32, #tpu.memory_space<vmem>>, %arg6: memref<128x128xf32, #tpu.memory_space<vmem>>, %arg7: memref<1x128xf32, #tpu.memory_space<vmem>>, %arg8: memref<2x128xf32, #tpu.memory_space<vmem>>) attributes {dimension_semantics = [#tpu.dimension_semantics<parallel>], iteration_bounds = array<i64: 1>, scalar_prefetch = 0 : i64, scratch_operands = 0 : i64, tpu.core_type = #tpu.core_type<tc>, window_params = [{transform_indices = @transform_0, window_bounds = array<i64: 2, 16, 16, 4>}, {pipeline_mode = #tpu.pipeline_mode<synchronous>, transform_indices = @transform_1, window_bounds = array<i64: 49, 4, 128>}, {pipeline_mode = #tpu.pipeline_mode<synchronous>, transform_indices = @transform_2, window_bounds = array<i64: 1, 128>}, {pipeline_mode = #tpu.pipeline_mode<synchronous>, transform_indices = @transform_3, window_bounds = array<i64: 128, 128>}, {pipeline_mode = #tpu.pipeline_mode<synchronous>, transform_indices = @transform_4, window_bounds = array<i64: 1, 128>}, {pipeline_mode = #tpu.pipeline_mode<synchronous>, transform_indices = @transform_5, window_bounds = array<i64: 128, 128>}, {pipeline_mode = #tpu.pipeline_mode<synchronous>, transform_indices = @transform_6, window_bounds = array<i64: 1, 128>}, {transform_indices = @transform_7, window_bounds = array<i64: 2, 128>}]} {
    %c0 = arith.constant 0 : index
    %c0_0 = arith.constant 0 : index
    %c0_1 = arith.constant 0 : index
    %c0_2 = arith.constant 0 : index
    %0 = vector.load %arg1[%c0, %c0_0, %c0_1, %c0_2] : memref<2x16x16x4xf32, #tpu.memory_space<vmem>>, vector<2x16x16x4xf32>
    %cst = arith.constant 0.000000e+00 : f32
    %1 = vector.broadcast %cst : f32 to vector<2x128xf32>
    %2 = vector.extract_strided_slice %0 {offsets = [0, 0, 0, 0], sizes = [2, 3, 16, 4], strides = [1, 1, 1, 1]} : vector<2x16x16x4xf32> to vector<2x3x16x4xf32>
    %3 = vector.extract_strided_slice %2 {offsets = [0, 0, 0, 0], sizes = [2, 1, 16, 4], strides = [1, 1, 1, 1]} : vector<2x3x16x4xf32> to vector<2x1x16x4xf32>
    %4 = vector.shape_cast %3 : vector<2x1x16x4xf32> to vector<2x16x4xf32>
    %5 = vector.extract_strided_slice %2 {offsets = [0, 1, 0, 0], sizes = [2, 1, 16, 4], strides = [1, 1, 1, 1]} : vector<2x3x16x4xf32> to vector<2x1x16x4xf32>
    %6 = vector.shape_cast %5 : vector<2x1x16x4xf32> to vector<2x16x4xf32>
    %7 = arith.maximumf %4, %6 : vector<2x16x4xf32>
    %8 = vector.extract_strided_slice %2 {offsets = [0, 2, 0, 0], sizes = [2, 1, 16, 4], strides = [1, 1, 1, 1]} : vector<2x3x16x4xf32> to vector<2x1x16x4xf32>
    %9 = vector.shape_cast %8 : vector<2x1x16x4xf32> to vector<2x16x4xf32>
    %10 = arith.maximumf %7, %9 : vector<2x16x4xf32>
    %11 = vector.extract_strided_slice %10 {offsets = [0, 0, 0], sizes = [2, 14, 4], strides = [1, 1, 1]} : vector<2x16x4xf32> to vector<2x14x4xf32>
    %12 = vector.extract_strided_slice %10 {offsets = [0, 1, 0], sizes = [2, 14, 4], strides = [1, 1, 1]} : vector<2x16x4xf32> to vector<2x14x4xf32>
    %13 = arith.maximumf %11, %12 : vector<2x14x4xf32>
    %14 = vector.extract_strided_slice %10 {offsets = [0, 2, 0], sizes = [2, 14, 4], strides = [1, 1, 1]} : vector<2x16x4xf32> to vector<2x14x4xf32>
    %15 = arith.maximumf %13, %14 : vector<2x14x4xf32>
    %cst_3 = arith.constant 0.000000e+00 : f32
    %16 = vector.broadcast %cst_3 : f32 to vector<2x14x4xf32>
    %17 = arith.maximumf %15, %16 : vector<2x14x4xf32>
    %18 = vector.extract_strided_slice %17 {offsets = [0, 0, 0], sizes = [2, 1, 4], strides = [1, 1, 1]} : vector<2x14x4xf32> to vector<2x1x4xf32>
    %19 = vector.shape_cast %18 : vector<2x1x4xf32> to vector<2x4xf32>
    %c0_4 = arith.constant 0 : index
    %c0_5 = arith.constant 0 : index
    %c0_6 = arith.constant 0 : index
    %20 = vector.load %arg2[%c0_4, %c0_5, %c0_6] : memref<49x4x128xf32, #tpu.memory_space<vmem>>, vector<1x4x128xf32>
    %21 = vector.shape_cast %20 : vector<1x4x128xf32> to vector<4x128xf32>
    %cst_7 = arith.constant dense<0.000000e+00> : vector<2x128xf32>
    %22 = tpu.matmul %19, %21, %cst_7 {dimension_numbers = #tpu.dot_dimension_numbers<[1], [0], [0], [1], [0, 0, 1, 1], [], []>} : vector<2x4xf32>, vector<4x128xf32>, vector<2x128xf32> -> vector<2x128xf32>
    %23 = arith.addf %1, %22 : vector<2x128xf32>
    %24 = vector.extract_strided_slice %17 {offsets = [0, 2, 0], sizes = [2, 1, 4], strides = [1, 1, 1]} : vector<2x14x4xf32> to vector<2x1x4xf32>
    %25 = vector.shape_cast %24 : vector<2x1x4xf32> to vector<2x4xf32>
    %c1 = arith.constant 1 : index
    %c0_8 = arith.constant 0 : index
    %c0_9 = arith.constant 0 : index
    %26 = vector.load %arg2[%c1, %c0_8, %c0_9] : memref<49x4x128xf32, #tpu.memory_space<vmem>>, vector<1x4x128xf32>
    %27 = vector.shape_cast %26 : vector<1x4x128xf32> to vector<4x128xf32>
    %cst_10 = arith.constant dense<0.000000e+00> : vector<2x128xf32>
    %28 = tpu.matmul %25, %27, %cst_10 {dimension_numbers = #tpu.dot_dimension_numbers<[1], [0], [0], [1], [0, 0, 1, 1], [], []>} : vector<2x4xf32>, vector<4x128xf32>, vector<2x128xf32> -> vector<2x128xf32>
    %29 = arith.addf %23, %28 : vector<2x128xf32>
    %30 = vector.extract_strided_slice %17 {offsets = [0, 4, 0], sizes = [2, 1, 4], strides = [1, 1, 1]} : vector<2x14x4xf32> to vector<2x1x4xf32>
    %31 = vector.shape_cast %30 : vector<2x1x4xf32> to vector<2x4xf32>
    %c2 = arith.constant 2 : index
    %c0_11 = arith.constant 0 : index
    %c0_12 = arith.constant 0 : index
    %32 = vector.load %arg2[%c2, %c0_11, %c0_12] : memref<49x4x128xf32, #tpu.memory_space<vmem>>, vector<1x4x128xf32>
    %33 = vector.shape_cast %32 : vector<1x4x128xf32> to vector<4x128xf32>
    %cst_13 = arith.constant dense<0.000000e+00> : vector<2x128xf32>
    %34 = tpu.matmul %31, %33, %cst_13 {dimension_numbers = #tpu.dot_dimension_numbers<[1], [0], [0], [1], [0, 0, 1, 1], [], []>} : vector<2x4xf32>, vector<4x128xf32>, vector<2x128xf32> -> vector<2x128xf32>
    %35 = arith.addf %29, %34 : vector<2x128xf32>
    %36 = vector.extract_strided_slice %17 {offsets = [0, 6, 0], sizes = [2, 1, 4], strides = [1, 1, 1]} : vector<2x14x4xf32> to vector<2x1x4xf32>
    %37 = vector.shape_cast %36 : vector<2x1x4xf32> to vector<2x4xf32>
    %c3 = arith.constant 3 : index
    %c0_14 = arith.constant 0 : index
    %c0_15 = arith.constant 0 : index
    %38 = vector.load %arg2[%c3, %c0_14, %c0_15] : memref<49x4x128xf32, #tpu.memory_space<vmem>>, vector<1x4x128xf32>
    %39 = vector.shape_cast %38 : vector<1x4x128xf32> to vector<4x128xf32>
    %cst_16 = arith.constant dense<0.000000e+00> : vector<2x128xf32>
    %40 = tpu.matmul %37, %39, %cst_16 {dimension_numbers = #tpu.dot_dimension_numbers<[1], [0], [0], [1], [0, 0, 1, 1], [], []>} : vector<2x4xf32>, vector<4x128xf32>, vector<2x128xf32> -> vector<2x128xf32>
    %41 = arith.addf %35, %40 : vector<2x128xf32>
    %42 = vector.extract_strided_slice %17 {offsets = [0, 8, 0], sizes = [2, 1, 4], strides = [1, 1, 1]} : vector<2x14x4xf32> to vector<2x1x4xf32>
    %43 = vector.shape_cast %42 : vector<2x1x4xf32> to vector<2x4xf32>
    %c4 = arith.constant 4 : index
    %c0_17 = arith.constant 0 : index
    %c0_18 = arith.constant 0 : index
    %44 = vector.load %arg2[%c4, %c0_17, %c0_18] : memref<49x4x128xf32, #tpu.memory_space<vmem>>, vector<1x4x128xf32>
    %45 = vector.shape_cast %44 : vector<1x4x128xf32> to vector<4x128xf32>
    %cst_19 = arith.constant dense<0.000000e+00> : vector<2x128xf32>
    %46 = tpu.matmul %43, %45, %cst_19 {dimension_numbers = #tpu.dot_dimension_numbers<[1], [0], [0], [1], [0, 0, 1, 1], [], []>} : vector<2x4xf32>, vector<4x128xf32>, vector<2x128xf32> -> vector<2x128xf32>
    %47 = arith.addf %41, %46 : vector<2x128xf32>
    %48 = vector.extract_strided_slice %17 {offsets = [0, 10, 0], sizes = [2, 1, 4], strides = [1, 1, 1]} : vector<2x14x4xf32> to vector<2x1x4xf32>
    %49 = vector.shape_cast %48 : vector<2x1x4xf32> to vector<2x4xf32>
    %c5 = arith.constant 5 : index
    %c0_20 = arith.constant 0 : index
    %c0_21 = arith.constant 0 : index
    %50 = vector.load %arg2[%c5, %c0_20, %c0_21] : memref<49x4x128xf32, #tpu.memory_space<vmem>>, vector<1x4x128xf32>
    %51 = vector.shape_cast %50 : vector<1x4x128xf32> to vector<4x128xf32>
    %cst_22 = arith.constant dense<0.000000e+00> : vector<2x128xf32>
    %52 = tpu.matmul %49, %51, %cst_22 {dimension_numbers = #tpu.dot_dimension_numbers<[1], [0], [0], [1], [0, 0, 1, 1], [], []>} : vector<2x4xf32>, vector<4x128xf32>, vector<2x128xf32> -> vector<2x128xf32>
    %53 = arith.addf %47, %52 : vector<2x128xf32>
    %54 = vector.extract_strided_slice %17 {offsets = [0, 12, 0], sizes = [2, 1, 4], strides = [1, 1, 1]} : vector<2x14x4xf32> to vector<2x1x4xf32>
    %55 = vector.shape_cast %54 : vector<2x1x4xf32> to vector<2x4xf32>
    %c6 = arith.constant 6 : index
    %c0_23 = arith.constant 0 : index
    %c0_24 = arith.constant 0 : index
    %56 = vector.load %arg2[%c6, %c0_23, %c0_24] : memref<49x4x128xf32, #tpu.memory_space<vmem>>, vector<1x4x128xf32>
    %57 = vector.shape_cast %56 : vector<1x4x128xf32> to vector<4x128xf32>
    %cst_25 = arith.constant dense<0.000000e+00> : vector<2x128xf32>
    %58 = tpu.matmul %55, %57, %cst_25 {dimension_numbers = #tpu.dot_dimension_numbers<[1], [0], [0], [1], [0, 0, 1, 1], [], []>} : vector<2x4xf32>, vector<4x128xf32>, vector<2x128xf32> -> vector<2x128xf32>
    %59 = arith.addf %53, %58 : vector<2x128xf32>
    %60 = vector.extract_strided_slice %0 {offsets = [0, 2, 0, 0], sizes = [2, 3, 16, 4], strides = [1, 1, 1, 1]} : vector<2x16x16x4xf32> to vector<2x3x16x4xf32>
    %61 = vector.extract_strided_slice %60 {offsets = [0, 0, 0, 0], sizes = [2, 1, 16, 4], strides = [1, 1, 1, 1]} : vector<2x3x16x4xf32> to vector<2x1x16x4xf32>
    %62 = vector.shape_cast %61 : vector<2x1x16x4xf32> to vector<2x16x4xf32>
    %63 = vector.extract_strided_slice %60 {offsets = [0, 1, 0, 0], sizes = [2, 1, 16, 4], strides = [1, 1, 1, 1]} : vector<2x3x16x4xf32> to vector<2x1x16x4xf32>
    %64 = vector.shape_cast %63 : vector<2x1x16x4xf32> to vector<2x16x4xf32>
    %65 = arith.maximumf %62, %64 : vector<2x16x4xf32>
    %66 = vector.extract_strided_slice %60 {offsets = [0, 2, 0, 0], sizes = [2, 1, 16, 4], strides = [1, 1, 1, 1]} : vector<2x3x16x4xf32> to vector<2x1x16x4xf32>
    %67 = vector.shape_cast %66 : vector<2x1x16x4xf32> to vector<2x16x4xf32>
    %68 = arith.maximumf %65, %67 : vector<2x16x4xf32>
    %69 = vector.extract_strided_slice %68 {offsets = [0, 0, 0], sizes = [2, 14, 4], strides = [1, 1, 1]} : vector<2x16x4xf32> to vector<2x14x4xf32>
    %70 = vector.extract_strided_slice %68 {offsets = [0, 1, 0], sizes = [2, 14, 4], strides = [1, 1, 1]} : vector<2x16x4xf32> to vector<2x14x4xf32>
    %71 = arith.maximumf %69, %70 : vector<2x14x4xf32>
    %72 = vector.extract_strided_slice %68 {offsets = [0, 2, 0], sizes = [2, 14, 4], strides = [1, 1, 1]} : vector<2x16x4xf32> to vector<2x14x4xf32>
    %73 = arith.maximumf %71, %72 : vector<2x14x4xf32>
    %cst_26 = arith.constant 0.000000e+00 : f32
    %74 = vector.broadcast %cst_26 : f32 to vector<2x14x4xf32>
    %75 = arith.maximumf %73, %74 : vector<2x14x4xf32>
    %76 = vector.extract_strided_slice %75 {offsets = [0, 0, 0], sizes = [2, 1, 4], strides = [1, 1, 1]} : vector<2x14x4xf32> to vector<2x1x4xf32>
    %77 = vector.shape_cast %76 : vector<2x1x4xf32> to vector<2x4xf32>
    %c7 = arith.constant 7 : index
    %c0_27 = arith.constant 0 : index
    %c0_28 = arith.constant 0 : index
    %78 = vector.load %arg2[%c7, %c0_27, %c0_28] : memref<49x4x128xf32, #tpu.memory_space<vmem>>, vector<1x4x128xf32>
    %79 = vector.shape_cast %78 : vector<1x4x128xf32> to vector<4x128xf32>
    %cst_29 = arith.constant dense<0.000000e+00> : vector<2x128xf32>
    %80 = tpu.matmul %77, %79, %cst_29 {dimension_numbers = #tpu.dot_dimension_numbers<[1], [0], [0], [1], [0, 0, 1, 1], [], []>} : vector<2x4xf32>, vector<4x128xf32>, vector<2x128xf32> -> vector<2x128xf32>
    %81 = arith.addf %59, %80 : vector<2x128xf32>
    %82 = vector.extract_strided_slice %75 {offsets = [0, 2, 0], sizes = [2, 1, 4], strides = [1, 1, 1]} : vector<2x14x4xf32> to vector<2x1x4xf32>
    %83 = vector.shape_cast %82 : vector<2x1x4xf32> to vector<2x4xf32>
    %c8 = arith.constant 8 : index
    %c0_30 = arith.constant 0 : index
    %c0_31 = arith.constant 0 : index
    %84 = vector.load %arg2[%c8, %c0_30, %c0_31] : memref<49x4x128xf32, #tpu.memory_space<vmem>>, vector<1x4x128xf32>
    %85 = vector.shape_cast %84 : vector<1x4x128xf32> to vector<4x128xf32>
    %cst_32 = arith.constant dense<0.000000e+00> : vector<2x128xf32>
    %86 = tpu.matmul %83, %85, %cst_32 {dimension_numbers = #tpu.dot_dimension_numbers<[1], [0], [0], [1], [0, 0, 1, 1], [], []>} : vector<2x4xf32>, vector<4x128xf32>, vector<2x128xf32> -> vector<2x128xf32>
    %87 = arith.addf %81, %86 : vector<2x128xf32>
    %88 = vector.extract_strided_slice %75 {offsets = [0, 4, 0], sizes = [2, 1, 4], strides = [1, 1, 1]} : vector<2x14x4xf32> to vector<2x1x4xf32>
    %89 = vector.shape_cast %88 : vector<2x1x4xf32> to vector<2x4xf32>
    %c9 = arith.constant 9 : index
    %c0_33 = arith.constant 0 : index
    %c0_34 = arith.constant 0 : index
    %90 = vector.load %arg2[%c9, %c0_33, %c0_34] : memref<49x4x128xf32, #tpu.memory_space<vmem>>, vector<1x4x128xf32>
    %91 = vector.shape_cast %90 : vector<1x4x128xf32> to vector<4x128xf32>
    %cst_35 = arith.constant dense<0.000000e+00> : vector<2x128xf32>
    %92 = tpu.matmul %89, %91, %cst_35 {dimension_numbers = #tpu.dot_dimension_numbers<[1], [0], [0], [1], [0, 0, 1, 1], [], []>} : vector<2x4xf32>, vector<4x128xf32>, vector<2x128xf32> -> vector<2x128xf32>
    %93 = arith.addf %87, %92 : vector<2x128xf32>
    %94 = vector.extract_strided_slice %75 {offsets = [0, 6, 0], sizes = [2, 1, 4], strides = [1, 1, 1]} : vector<2x14x4xf32> to vector<2x1x4xf32>
    %95 = vector.shape_cast %94 : vector<2x1x4xf32> to vector<2x4xf32>
    %c10 = arith.constant 10 : index
    %c0_36 = arith.constant 0 : index
    %c0_37 = arith.constant 0 : index
    %96 = vector.load %arg2[%c10, %c0_36, %c0_37] : memref<49x4x128xf32, #tpu.memory_space<vmem>>, vector<1x4x128xf32>
    %97 = vector.shape_cast %96 : vector<1x4x128xf32> to vector<4x128xf32>
    %cst_38 = arith.constant dense<0.000000e+00> : vector<2x128xf32>
    %98 = tpu.matmul %95, %97, %cst_38 {dimension_numbers = #tpu.dot_dimension_numbers<[1], [0], [0], [1], [0, 0, 1, 1], [], []>} : vector<2x4xf32>, vector<4x128xf32>, vector<2x128xf32> -> vector<2x128xf32>
    %99 = arith.addf %93, %98 : vector<2x128xf32>
    %100 = vector.extract_strided_slice %75 {offsets = [0, 8, 0], sizes = [2, 1, 4], strides = [1, 1, 1]} : vector<2x14x4xf32> to vector<2x1x4xf32>
    %101 = vector.shape_cast %100 : vector<2x1x4xf32> to vector<2x4xf32>
    %c11 = arith.constant 11 : index
    %c0_39 = arith.constant 0 : index
    %c0_40 = arith.constant 0 : index
    %102 = vector.load %arg2[%c11, %c0_39, %c0_40] : memref<49x4x128xf32, #tpu.memory_space<vmem>>, vector<1x4x128xf32>
    %103 = vector.shape_cast %102 : vector<1x4x128xf32> to vector<4x128xf32>
    %cst_41 = arith.constant dense<0.000000e+00> : vector<2x128xf32>
    %104 = tpu.matmul %101, %103, %cst_41 {dimension_numbers = #tpu.dot_dimension_numbers<[1], [0], [0], [1], [0, 0, 1, 1], [], []>} : vector<2x4xf32>, vector<4x128xf32>, vector<2x128xf32> -> vector<2x128xf32>
    %105 = arith.addf %99, %104 : vector<2x128xf32>
    %106 = vector.extract_strided_slice %75 {offsets = [0, 10, 0], sizes = [2, 1, 4], strides = [1, 1, 1]} : vector<2x14x4xf32> to vector<2x1x4xf32>
    %107 = vector.shape_cast %106 : vector<2x1x4xf32> to vector<2x4xf32>
    %c12 = arith.constant 12 : index
    %c0_42 = arith.constant 0 : index
    %c0_43 = arith.constant 0 : index
    %108 = vector.load %arg2[%c12, %c0_42, %c0_43] : memref<49x4x128xf32, #tpu.memory_space<vmem>>, vector<1x4x128xf32>
    %109 = vector.shape_cast %108 : vector<1x4x128xf32> to vector<4x128xf32>
    %cst_44 = arith.constant dense<0.000000e+00> : vector<2x128xf32>
    %110 = tpu.matmul %107, %109, %cst_44 {dimension_numbers = #tpu.dot_dimension_numbers<[1], [0], [0], [1], [0, 0, 1, 1], [], []>} : vector<2x4xf32>, vector<4x128xf32>, vector<2x128xf32> -> vector<2x128xf32>
    %111 = arith.addf %105, %110 : vector<2x128xf32>
    %112 = vector.extract_strided_slice %75 {offsets = [0, 12, 0], sizes = [2, 1, 4], strides = [1, 1, 1]} : vector<2x14x4xf32> to vector<2x1x4xf32>
    %113 = vector.shape_cast %112 : vector<2x1x4xf32> to vector<2x4xf32>
    %c13 = arith.constant 13 : index
    %c0_45 = arith.constant 0 : index
    %c0_46 = arith.constant 0 : index
    %114 = vector.load %arg2[%c13, %c0_45, %c0_46] : memref<49x4x128xf32, #tpu.memory_space<vmem>>, vector<1x4x128xf32>
    %115 = vector.shape_cast %114 : vector<1x4x128xf32> to vector<4x128xf32>
    %cst_47 = arith.constant dense<0.000000e+00> : vector<2x128xf32>
    %116 = tpu.matmul %113, %115, %cst_47 {dimension_numbers = #tpu.dot_dimension_numbers<[1], [0], [0], [1], [0, 0, 1, 1], [], []>} : vector<2x4xf32>, vector<4x128xf32>, vector<2x128xf32> -> vector<2x128xf32>
    %117 = arith.addf %111, %116 : vector<2x128xf32>
    %118 = vector.extract_strided_slice %0 {offsets = [0, 4, 0, 0], sizes = [2, 3, 16, 4], strides = [1, 1, 1, 1]} : vector<2x16x16x4xf32> to vector<2x3x16x4xf32>
    %119 = vector.extract_strided_slice %118 {offsets = [0, 0, 0, 0], sizes = [2, 1, 16, 4], strides = [1, 1, 1, 1]} : vector<2x3x16x4xf32> to vector<2x1x16x4xf32>
    %120 = vector.shape_cast %119 : vector<2x1x16x4xf32> to vector<2x16x4xf32>
    %121 = vector.extract_strided_slice %118 {offsets = [0, 1, 0, 0], sizes = [2, 1, 16, 4], strides = [1, 1, 1, 1]} : vector<2x3x16x4xf32> to vector<2x1x16x4xf32>
    %122 = vector.shape_cast %121 : vector<2x1x16x4xf32> to vector<2x16x4xf32>
    %123 = arith.maximumf %120, %122 : vector<2x16x4xf32>
    %124 = vector.extract_strided_slice %118 {offsets = [0, 2, 0, 0], sizes = [2, 1, 16, 4], strides = [1, 1, 1, 1]} : vector<2x3x16x4xf32> to vector<2x1x16x4xf32>
    %125 = vector.shape_cast %124 : vector<2x1x16x4xf32> to vector<2x16x4xf32>
    %126 = arith.maximumf %123, %125 : vector<2x16x4xf32>
    %127 = vector.extract_strided_slice %126 {offsets = [0, 0, 0], sizes = [2, 14, 4], strides = [1, 1, 1]} : vector<2x16x4xf32> to vector<2x14x4xf32>
    %128 = vector.extract_strided_slice %126 {offsets = [0, 1, 0], sizes = [2, 14, 4], strides = [1, 1, 1]} : vector<2x16x4xf32> to vector<2x14x4xf32>
    %129 = arith.maximumf %127, %128 : vector<2x14x4xf32>
    %130 = vector.extract_strided_slice %126 {offsets = [0, 2, 0], sizes = [2, 14, 4], strides = [1, 1, 1]} : vector<2x16x4xf32> to vector<2x14x4xf32>
    %131 = arith.maximumf %129, %130 : vector<2x14x4xf32>
    %cst_48 = arith.constant 0.000000e+00 : f32
    %132 = vector.broadcast %cst_48 : f32 to vector<2x14x4xf32>
    %133 = arith.maximumf %131, %132 : vector<2x14x4xf32>
    %134 = vector.extract_strided_slice %133 {offsets = [0, 0, 0], sizes = [2, 1, 4], strides = [1, 1, 1]} : vector<2x14x4xf32> to vector<2x1x4xf32>
    %135 = vector.shape_cast %134 : vector<2x1x4xf32> to vector<2x4xf32>
    %c14 = arith.constant 14 : index
    %c0_49 = arith.constant 0 : index
    %c0_50 = arith.constant 0 : index
    %136 = vector.load %arg2[%c14, %c0_49, %c0_50] : memref<49x4x128xf32, #tpu.memory_space<vmem>>, vector<1x4x128xf32>
    %137 = vector.shape_cast %136 : vector<1x4x128xf32> to vector<4x128xf32>
    %cst_51 = arith.constant dense<0.000000e+00> : vector<2x128xf32>
    %138 = tpu.matmul %135, %137, %cst_51 {dimension_numbers = #tpu.dot_dimension_numbers<[1], [0], [0], [1], [0, 0, 1, 1], [], []>} : vector<2x4xf32>, vector<4x128xf32>, vector<2x128xf32> -> vector<2x128xf32>
    %139 = arith.addf %117, %138 : vector<2x128xf32>
    %140 = vector.extract_strided_slice %133 {offsets = [0, 2, 0], sizes = [2, 1, 4], strides = [1, 1, 1]} : vector<2x14x4xf32> to vector<2x1x4xf32>
    %141 = vector.shape_cast %140 : vector<2x1x4xf32> to vector<2x4xf32>
    %c15 = arith.constant 15 : index
    %c0_52 = arith.constant 0 : index
    %c0_53 = arith.constant 0 : index
    %142 = vector.load %arg2[%c15, %c0_52, %c0_53] : memref<49x4x128xf32, #tpu.memory_space<vmem>>, vector<1x4x128xf32>
    %143 = vector.shape_cast %142 : vector<1x4x128xf32> to vector<4x128xf32>
    %cst_54 = arith.constant dense<0.000000e+00> : vector<2x128xf32>
    %144 = tpu.matmul %141, %143, %cst_54 {dimension_numbers = #tpu.dot_dimension_numbers<[1], [0], [0], [1], [0, 0, 1, 1], [], []>} : vector<2x4xf32>, vector<4x128xf32>, vector<2x128xf32> -> vector<2x128xf32>
    %145 = arith.addf %139, %144 : vector<2x128xf32>
    %146 = vector.extract_strided_slice %133 {offsets = [0, 4, 0], sizes = [2, 1, 4], strides = [1, 1, 1]} : vector<2x14x4xf32> to vector<2x1x4xf32>
    %147 = vector.shape_cast %146 : vector<2x1x4xf32> to vector<2x4xf32>
    %c16 = arith.constant 16 : index
    %c0_55 = arith.constant 0 : index
    %c0_56 = arith.constant 0 : index
    %148 = vector.load %arg2[%c16, %c0_55, %c0_56] : memref<49x4x128xf32, #tpu.memory_space<vmem>>, vector<1x4x128xf32>
    %149 = vector.shape_cast %148 : vector<1x4x128xf32> to vector<4x128xf32>
    %cst_57 = arith.constant dense<0.000000e+00> : vector<2x128xf32>
    %150 = tpu.matmul %147, %149, %cst_57 {dimension_numbers = #tpu.dot_dimension_numbers<[1], [0], [0], [1], [0, 0, 1, 1], [], []>} : vector<2x4xf32>, vector<4x128xf32>, vector<2x128xf32> -> vector<2x128xf32>
    %151 = arith.addf %145, %150 : vector<2x128xf32>
    %152 = vector.extract_strided_slice %133 {offsets = [0, 6, 0], sizes = [2, 1, 4], strides = [1, 1, 1]} : vector<2x14x4xf32> to vector<2x1x4xf32>
    %153 = vector.shape_cast %152 : vector<2x1x4xf32> to vector<2x4xf32>
    %c17 = arith.constant 17 : index
    %c0_58 = arith.constant 0 : index
    %c0_59 = arith.constant 0 : index
    %154 = vector.load %arg2[%c17, %c0_58, %c0_59] : memref<49x4x128xf32, #tpu.memory_space<vmem>>, vector<1x4x128xf32>
    %155 = vector.shape_cast %154 : vector<1x4x128xf32> to vector<4x128xf32>
    %cst_60 = arith.constant dense<0.000000e+00> : vector<2x128xf32>
    %156 = tpu.matmul %153, %155, %cst_60 {dimension_numbers = #tpu.dot_dimension_numbers<[1], [0], [0], [1], [0, 0, 1, 1], [], []>} : vector<2x4xf32>, vector<4x128xf32>, vector<2x128xf32> -> vector<2x128xf32>
    %157 = arith.addf %151, %156 : vector<2x128xf32>
    %158 = vector.extract_strided_slice %133 {offsets = [0, 8, 0], sizes = [2, 1, 4], strides = [1, 1, 1]} : vector<2x14x4xf32> to vector<2x1x4xf32>
    %159 = vector.shape_cast %158 : vector<2x1x4xf32> to vector<2x4xf32>
    %c18 = arith.constant 18 : index
    %c0_61 = arith.constant 0 : index
    %c0_62 = arith.constant 0 : index
    %160 = vector.load %arg2[%c18, %c0_61, %c0_62] : memref<49x4x128xf32, #tpu.memory_space<vmem>>, vector<1x4x128xf32>
    %161 = vector.shape_cast %160 : vector<1x4x128xf32> to vector<4x128xf32>
    %cst_63 = arith.constant dense<0.000000e+00> : vector<2x128xf32>
    %162 = tpu.matmul %159, %161, %cst_63 {dimension_numbers = #tpu.dot_dimension_numbers<[1], [0], [0], [1], [0, 0, 1, 1], [], []>} : vector<2x4xf32>, vector<4x128xf32>, vector<2x128xf32> -> vector<2x128xf32>
    %163 = arith.addf %157, %162 : vector<2x128xf32>
    %164 = vector.extract_strided_slice %133 {offsets = [0, 10, 0], sizes = [2, 1, 4], strides = [1, 1, 1]} : vector<2x14x4xf32> to vector<2x1x4xf32>
    %165 = vector.shape_cast %164 : vector<2x1x4xf32> to vector<2x4xf32>
    %c19 = arith.constant 19 : index
    %c0_64 = arith.constant 0 : index
    %c0_65 = arith.constant 0 : index
    %166 = vector.load %arg2[%c19, %c0_64, %c0_65] : memref<49x4x128xf32, #tpu.memory_space<vmem>>, vector<1x4x128xf32>
    %167 = vector.shape_cast %166 : vector<1x4x128xf32> to vector<4x128xf32>
    %cst_66 = arith.constant dense<0.000000e+00> : vector<2x128xf32>
    %168 = tpu.matmul %165, %167, %cst_66 {dimension_numbers = #tpu.dot_dimension_numbers<[1], [0], [0], [1], [0, 0, 1, 1], [], []>} : vector<2x4xf32>, vector<4x128xf32>, vector<2x128xf32> -> vector<2x128xf32>
    %169 = arith.addf %163, %168 : vector<2x128xf32>
    %170 = vector.extract_strided_slice %133 {offsets = [0, 12, 0], sizes = [2, 1, 4], strides = [1, 1, 1]} : vector<2x14x4xf32> to vector<2x1x4xf32>
    %171 = vector.shape_cast %170 : vector<2x1x4xf32> to vector<2x4xf32>
    %c20 = arith.constant 20 : index
    %c0_67 = arith.constant 0 : index
    %c0_68 = arith.constant 0 : index
    %172 = vector.load %arg2[%c20, %c0_67, %c0_68] : memref<49x4x128xf32, #tpu.memory_space<vmem>>, vector<1x4x128xf32>
    %173 = vector.shape_cast %172 : vector<1x4x128xf32> to vector<4x128xf32>
    %cst_69 = arith.constant dense<0.000000e+00> : vector<2x128xf32>
    %174 = tpu.matmul %171, %173, %cst_69 {dimension_numbers = #tpu.dot_dimension_numbers<[1], [0], [0], [1], [0, 0, 1, 1], [], []>} : vector<2x4xf32>, vector<4x128xf32>, vector<2x128xf32> -> vector<2x128xf32>
    %175 = arith.addf %169, %174 : vector<2x128xf32>
    %176 = vector.extract_strided_slice %0 {offsets = [0, 6, 0, 0], sizes = [2, 3, 16, 4], strides = [1, 1, 1, 1]} : vector<2x16x16x4xf32> to vector<2x3x16x4xf32>
    %177 = vector.extract_strided_slice %176 {offsets = [0, 0, 0, 0], sizes = [2, 1, 16, 4], strides = [1, 1, 1, 1]} : vector<2x3x16x4xf32> to vector<2x1x16x4xf32>
    %178 = vector.shape_cast %177 : vector<2x1x16x4xf32> to vector<2x16x4xf32>
    %179 = vector.extract_strided_slice %176 {offsets = [0, 1, 0, 0], sizes = [2, 1, 16, 4], strides = [1, 1, 1, 1]} : vector<2x3x16x4xf32> to vector<2x1x16x4xf32>
    %180 = vector.shape_cast %179 : vector<2x1x16x4xf32> to vector<2x16x4xf32>
    %181 = arith.maximumf %178, %180 : vector<2x16x4xf32>
    %182 = vector.extract_strided_slice %176 {offsets = [0, 2, 0, 0], sizes = [2, 1, 16, 4], strides = [1, 1, 1, 1]} : vector<2x3x16x4xf32> to vector<2x1x16x4xf32>
    %183 = vector.shape_cast %182 : vector<2x1x16x4xf32> to vector<2x16x4xf32>
    %184 = arith.maximumf %181, %183 : vector<2x16x4xf32>
    %185 = vector.extract_strided_slice %184 {offsets = [0, 0, 0], sizes = [2, 14, 4], strides = [1, 1, 1]} : vector<2x16x4xf32> to vector<2x14x4xf32>
    %186 = vector.extract_strided_slice %184 {offsets = [0, 1, 0], sizes = [2, 14, 4], strides = [1, 1, 1]} : vector<2x16x4xf32> to vector<2x14x4xf32>
    %187 = arith.maximumf %185, %186 : vector<2x14x4xf32>
    %188 = vector.extract_strided_slice %184 {offsets = [0, 2, 0], sizes = [2, 14, 4], strides = [1, 1, 1]} : vector<2x16x4xf32> to vector<2x14x4xf32>
    %189 = arith.maximumf %187, %188 : vector<2x14x4xf32>
    %cst_70 = arith.constant 0.000000e+00 : f32
    %190 = vector.broadcast %cst_70 : f32 to vector<2x14x4xf32>
    %191 = arith.maximumf %189, %190 : vector<2x14x4xf32>
    %192 = vector.extract_strided_slice %191 {offsets = [0, 0, 0], sizes = [2, 1, 4], strides = [1, 1, 1]} : vector<2x14x4xf32> to vector<2x1x4xf32>
    %193 = vector.shape_cast %192 : vector<2x1x4xf32> to vector<2x4xf32>
    %c21 = arith.constant 21 : index
    %c0_71 = arith.constant 0 : index
    %c0_72 = arith.constant 0 : index
    %194 = vector.load %arg2[%c21, %c0_71, %c0_72] : memref<49x4x128xf32, #tpu.memory_space<vmem>>, vector<1x4x128xf32>
    %195 = vector.shape_cast %194 : vector<1x4x128xf32> to vector<4x128xf32>
    %cst_73 = arith.constant dense<0.000000e+00> : vector<2x128xf32>
    %196 = tpu.matmul %193, %195, %cst_73 {dimension_numbers = #tpu.dot_dimension_numbers<[1], [0], [0], [1], [0, 0, 1, 1], [], []>} : vector<2x4xf32>, vector<4x128xf32>, vector<2x128xf32> -> vector<2x128xf32>
    %197 = arith.addf %175, %196 : vector<2x128xf32>
    %198 = vector.extract_strided_slice %191 {offsets = [0, 2, 0], sizes = [2, 1, 4], strides = [1, 1, 1]} : vector<2x14x4xf32> to vector<2x1x4xf32>
    %199 = vector.shape_cast %198 : vector<2x1x4xf32> to vector<2x4xf32>
    %c22 = arith.constant 22 : index
    %c0_74 = arith.constant 0 : index
    %c0_75 = arith.constant 0 : index
    %200 = vector.load %arg2[%c22, %c0_74, %c0_75] : memref<49x4x128xf32, #tpu.memory_space<vmem>>, vector<1x4x128xf32>
    %201 = vector.shape_cast %200 : vector<1x4x128xf32> to vector<4x128xf32>
    %cst_76 = arith.constant dense<0.000000e+00> : vector<2x128xf32>
    %202 = tpu.matmul %199, %201, %cst_76 {dimension_numbers = #tpu.dot_dimension_numbers<[1], [0], [0], [1], [0, 0, 1, 1], [], []>} : vector<2x4xf32>, vector<4x128xf32>, vector<2x128xf32> -> vector<2x128xf32>
    %203 = arith.addf %197, %202 : vector<2x128xf32>
    %204 = vector.extract_strided_slice %191 {offsets = [0, 4, 0], sizes = [2, 1, 4], strides = [1, 1, 1]} : vector<2x14x4xf32> to vector<2x1x4xf32>
    %205 = vector.shape_cast %204 : vector<2x1x4xf32> to vector<2x4xf32>
    %c23 = arith.constant 23 : index
    %c0_77 = arith.constant 0 : index
    %c0_78 = arith.constant 0 : index
    %206 = vector.load %arg2[%c23, %c0_77, %c0_78] : memref<49x4x128xf32, #tpu.memory_space<vmem>>, vector<1x4x128xf32>
    %207 = vector.shape_cast %206 : vector<1x4x128xf32> to vector<4x128xf32>
    %cst_79 = arith.constant dense<0.000000e+00> : vector<2x128xf32>
    %208 = tpu.matmul %205, %207, %cst_79 {dimension_numbers = #tpu.dot_dimension_numbers<[1], [0], [0], [1], [0, 0, 1, 1], [], []>} : vector<2x4xf32>, vector<4x128xf32>, vector<2x128xf32> -> vector<2x128xf32>
    %209 = arith.addf %203, %208 : vector<2x128xf32>
    %210 = vector.extract_strided_slice %191 {offsets = [0, 6, 0], sizes = [2, 1, 4], strides = [1, 1, 1]} : vector<2x14x4xf32> to vector<2x1x4xf32>
    %211 = vector.shape_cast %210 : vector<2x1x4xf32> to vector<2x4xf32>
    %c24 = arith.constant 24 : index
    %c0_80 = arith.constant 0 : index
    %c0_81 = arith.constant 0 : index
    %212 = vector.load %arg2[%c24, %c0_80, %c0_81] : memref<49x4x128xf32, #tpu.memory_space<vmem>>, vector<1x4x128xf32>
    %213 = vector.shape_cast %212 : vector<1x4x128xf32> to vector<4x128xf32>
    %cst_82 = arith.constant dense<0.000000e+00> : vector<2x128xf32>
    %214 = tpu.matmul %211, %213, %cst_82 {dimension_numbers = #tpu.dot_dimension_numbers<[1], [0], [0], [1], [0, 0, 1, 1], [], []>} : vector<2x4xf32>, vector<4x128xf32>, vector<2x128xf32> -> vector<2x128xf32>
    %215 = arith.addf %209, %214 : vector<2x128xf32>
    %216 = vector.extract_strided_slice %191 {offsets = [0, 8, 0], sizes = [2, 1, 4], strides = [1, 1, 1]} : vector<2x14x4xf32> to vector<2x1x4xf32>
    %217 = vector.shape_cast %216 : vector<2x1x4xf32> to vector<2x4xf32>
    %c25 = arith.constant 25 : index
    %c0_83 = arith.constant 0 : index
    %c0_84 = arith.constant 0 : index
    %218 = vector.load %arg2[%c25, %c0_83, %c0_84] : memref<49x4x128xf32, #tpu.memory_space<vmem>>, vector<1x4x128xf32>
    %219 = vector.shape_cast %218 : vector<1x4x128xf32> to vector<4x128xf32>
    %cst_85 = arith.constant dense<0.000000e+00> : vector<2x128xf32>
    %220 = tpu.matmul %217, %219, %cst_85 {dimension_numbers = #tpu.dot_dimension_numbers<[1], [0], [0], [1], [0, 0, 1, 1], [], []>} : vector<2x4xf32>, vector<4x128xf32>, vector<2x128xf32> -> vector<2x128xf32>
    %221 = arith.addf %215, %220 : vector<2x128xf32>
    %222 = vector.extract_strided_slice %191 {offsets = [0, 10, 0], sizes = [2, 1, 4], strides = [1, 1, 1]} : vector<2x14x4xf32> to vector<2x1x4xf32>
    %223 = vector.shape_cast %222 : vector<2x1x4xf32> to vector<2x4xf32>
    %c26 = arith.constant 26 : index
    %c0_86 = arith.constant 0 : index
    %c0_87 = arith.constant 0 : index
    %224 = vector.load %arg2[%c26, %c0_86, %c0_87] : memref<49x4x128xf32, #tpu.memory_space<vmem>>, vector<1x4x128xf32>
    %225 = vector.shape_cast %224 : vector<1x4x128xf32> to vector<4x128xf32>
    %cst_88 = arith.constant dense<0.000000e+00> : vector<2x128xf32>
    %226 = tpu.matmul %223, %225, %cst_88 {dimension_numbers = #tpu.dot_dimension_numbers<[1], [0], [0], [1], [0, 0, 1, 1], [], []>} : vector<2x4xf32>, vector<4x128xf32>, vector<2x128xf32> -> vector<2x128xf32>
    %227 = arith.addf %221, %226 : vector<2x128xf32>
    %228 = vector.extract_strided_slice %191 {offsets = [0, 12, 0], sizes = [2, 1, 4], strides = [1, 1, 1]} : vector<2x14x4xf32> to vector<2x1x4xf32>
    %229 = vector.shape_cast %228 : vector<2x1x4xf32> to vector<2x4xf32>
    %c27 = arith.constant 27 : index
    %c0_89 = arith.constant 0 : index
    %c0_90 = arith.constant 0 : index
    %230 = vector.load %arg2[%c27, %c0_89, %c0_90] : memref<49x4x128xf32, #tpu.memory_space<vmem>>, vector<1x4x128xf32>
    %231 = vector.shape_cast %230 : vector<1x4x128xf32> to vector<4x128xf32>
    %cst_91 = arith.constant dense<0.000000e+00> : vector<2x128xf32>
    %232 = tpu.matmul %229, %231, %cst_91 {dimension_numbers = #tpu.dot_dimension_numbers<[1], [0], [0], [1], [0, 0, 1, 1], [], []>} : vector<2x4xf32>, vector<4x128xf32>, vector<2x128xf32> -> vector<2x128xf32>
    %233 = arith.addf %227, %232 : vector<2x128xf32>
    %234 = vector.extract_strided_slice %0 {offsets = [0, 8, 0, 0], sizes = [2, 3, 16, 4], strides = [1, 1, 1, 1]} : vector<2x16x16x4xf32> to vector<2x3x16x4xf32>
    %235 = vector.extract_strided_slice %234 {offsets = [0, 0, 0, 0], sizes = [2, 1, 16, 4], strides = [1, 1, 1, 1]} : vector<2x3x16x4xf32> to vector<2x1x16x4xf32>
    %236 = vector.shape_cast %235 : vector<2x1x16x4xf32> to vector<2x16x4xf32>
    %237 = vector.extract_strided_slice %234 {offsets = [0, 1, 0, 0], sizes = [2, 1, 16, 4], strides = [1, 1, 1, 1]} : vector<2x3x16x4xf32> to vector<2x1x16x4xf32>
    %238 = vector.shape_cast %237 : vector<2x1x16x4xf32> to vector<2x16x4xf32>
    %239 = arith.maximumf %236, %238 : vector<2x16x4xf32>
    %240 = vector.extract_strided_slice %234 {offsets = [0, 2, 0, 0], sizes = [2, 1, 16, 4], strides = [1, 1, 1, 1]} : vector<2x3x16x4xf32> to vector<2x1x16x4xf32>
    %241 = vector.shape_cast %240 : vector<2x1x16x4xf32> to vector<2x16x4xf32>
    %242 = arith.maximumf %239, %241 : vector<2x16x4xf32>
    %243 = vector.extract_strided_slice %242 {offsets = [0, 0, 0], sizes = [2, 14, 4], strides = [1, 1, 1]} : vector<2x16x4xf32> to vector<2x14x4xf32>
    %244 = vector.extract_strided_slice %242 {offsets = [0, 1, 0], sizes = [2, 14, 4], strides = [1, 1, 1]} : vector<2x16x4xf32> to vector<2x14x4xf32>
    %245 = arith.maximumf %243, %244 : vector<2x14x4xf32>
    %246 = vector.extract_strided_slice %242 {offsets = [0, 2, 0], sizes = [2, 14, 4], strides = [1, 1, 1]} : vector<2x16x4xf32> to vector<2x14x4xf32>
    %247 = arith.maximumf %245, %246 : vector<2x14x4xf32>
    %cst_92 = arith.constant 0.000000e+00 : f32
    %248 = vector.broadcast %cst_92 : f32 to vector<2x14x4xf32>
    %249 = arith.maximumf %247, %248 : vector<2x14x4xf32>
    %250 = vector.extract_strided_slice %249 {offsets = [0, 0, 0], sizes = [2, 1, 4], strides = [1, 1, 1]} : vector<2x14x4xf32> to vector<2x1x4xf32>
    %251 = vector.shape_cast %250 : vector<2x1x4xf32> to vector<2x4xf32>
    %c28 = arith.constant 28 : index
    %c0_93 = arith.constant 0 : index
    %c0_94 = arith.constant 0 : index
    %252 = vector.load %arg2[%c28, %c0_93, %c0_94] : memref<49x4x128xf32, #tpu.memory_space<vmem>>, vector<1x4x128xf32>
    %253 = vector.shape_cast %252 : vector<1x4x128xf32> to vector<4x128xf32>
    %cst_95 = arith.constant dense<0.000000e+00> : vector<2x128xf32>
    %254 = tpu.matmul %251, %253, %cst_95 {dimension_numbers = #tpu.dot_dimension_numbers<[1], [0], [0], [1], [0, 0, 1, 1], [], []>} : vector<2x4xf32>, vector<4x128xf32>, vector<2x128xf32> -> vector<2x128xf32>
    %255 = arith.addf %233, %254 : vector<2x128xf32>
    %256 = vector.extract_strided_slice %249 {offsets = [0, 2, 0], sizes = [2, 1, 4], strides = [1, 1, 1]} : vector<2x14x4xf32> to vector<2x1x4xf32>
    %257 = vector.shape_cast %256 : vector<2x1x4xf32> to vector<2x4xf32>
    %c29 = arith.constant 29 : index
    %c0_96 = arith.constant 0 : index
    %c0_97 = arith.constant 0 : index
    %258 = vector.load %arg2[%c29, %c0_96, %c0_97] : memref<49x4x128xf32, #tpu.memory_space<vmem>>, vector<1x4x128xf32>
    %259 = vector.shape_cast %258 : vector<1x4x128xf32> to vector<4x128xf32>
    %cst_98 = arith.constant dense<0.000000e+00> : vector<2x128xf32>
    %260 = tpu.matmul %257, %259, %cst_98 {dimension_numbers = #tpu.dot_dimension_numbers<[1], [0], [0], [1], [0, 0, 1, 1], [], []>} : vector<2x4xf32>, vector<4x128xf32>, vector<2x128xf32> -> vector<2x128xf32>
    %261 = arith.addf %255, %260 : vector<2x128xf32>
    %262 = vector.extract_strided_slice %249 {offsets = [0, 4, 0], sizes = [2, 1, 4], strides = [1, 1, 1]} : vector<2x14x4xf32> to vector<2x1x4xf32>
    %263 = vector.shape_cast %262 : vector<2x1x4xf32> to vector<2x4xf32>
    %c30 = arith.constant 30 : index
    %c0_99 = arith.constant 0 : index
    %c0_100 = arith.constant 0 : index
    %264 = vector.load %arg2[%c30, %c0_99, %c0_100] : memref<49x4x128xf32, #tpu.memory_space<vmem>>, vector<1x4x128xf32>
    %265 = vector.shape_cast %264 : vector<1x4x128xf32> to vector<4x128xf32>
    %cst_101 = arith.constant dense<0.000000e+00> : vector<2x128xf32>
    %266 = tpu.matmul %263, %265, %cst_101 {dimension_numbers = #tpu.dot_dimension_numbers<[1], [0], [0], [1], [0, 0, 1, 1], [], []>} : vector<2x4xf32>, vector<4x128xf32>, vector<2x128xf32> -> vector<2x128xf32>
    %267 = arith.addf %261, %266 : vector<2x128xf32>
    %268 = vector.extract_strided_slice %249 {offsets = [0, 6, 0], sizes = [2, 1, 4], strides = [1, 1, 1]} : vector<2x14x4xf32> to vector<2x1x4xf32>
    %269 = vector.shape_cast %268 : vector<2x1x4xf32> to vector<2x4xf32>
    %c31 = arith.constant 31 : index
    %c0_102 = arith.constant 0 : index
    %c0_103 = arith.constant 0 : index
    %270 = vector.load %arg2[%c31, %c0_102, %c0_103] : memref<49x4x128xf32, #tpu.memory_space<vmem>>, vector<1x4x128xf32>
    %271 = vector.shape_cast %270 : vector<1x4x128xf32> to vector<4x128xf32>
    %cst_104 = arith.constant dense<0.000000e+00> : vector<2x128xf32>
    %272 = tpu.matmul %269, %271, %cst_104 {dimension_numbers = #tpu.dot_dimension_numbers<[1], [0], [0], [1], [0, 0, 1, 1], [], []>} : vector<2x4xf32>, vector<4x128xf32>, vector<2x128xf32> -> vector<2x128xf32>
    %273 = arith.addf %267, %272 : vector<2x128xf32>
    %274 = vector.extract_strided_slice %249 {offsets = [0, 8, 0], sizes = [2, 1, 4], strides = [1, 1, 1]} : vector<2x14x4xf32> to vector<2x1x4xf32>
    %275 = vector.shape_cast %274 : vector<2x1x4xf32> to vector<2x4xf32>
    %c32 = arith.constant 32 : index
    %c0_105 = arith.constant 0 : index
    %c0_106 = arith.constant 0 : index
    %276 = vector.load %arg2[%c32, %c0_105, %c0_106] : memref<49x4x128xf32, #tpu.memory_space<vmem>>, vector<1x4x128xf32>
    %277 = vector.shape_cast %276 : vector<1x4x128xf32> to vector<4x128xf32>
    %cst_107 = arith.constant dense<0.000000e+00> : vector<2x128xf32>
    %278 = tpu.matmul %275, %277, %cst_107 {dimension_numbers = #tpu.dot_dimension_numbers<[1], [0], [0], [1], [0, 0, 1, 1], [], []>} : vector<2x4xf32>, vector<4x128xf32>, vector<2x128xf32> -> vector<2x128xf32>
    %279 = arith.addf %273, %278 : vector<2x128xf32>
    %280 = vector.extract_strided_slice %249 {offsets = [0, 10, 0], sizes = [2, 1, 4], strides = [1, 1, 1]} : vector<2x14x4xf32> to vector<2x1x4xf32>
    %281 = vector.shape_cast %280 : vector<2x1x4xf32> to vector<2x4xf32>
    %c33 = arith.constant 33 : index
    %c0_108 = arith.constant 0 : index
    %c0_109 = arith.constant 0 : index
    %282 = vector.load %arg2[%c33, %c0_108, %c0_109] : memref<49x4x128xf32, #tpu.memory_space<vmem>>, vector<1x4x128xf32>
    %283 = vector.shape_cast %282 : vector<1x4x128xf32> to vector<4x128xf32>
    %cst_110 = arith.constant dense<0.000000e+00> : vector<2x128xf32>
    %284 = tpu.matmul %281, %283, %cst_110 {dimension_numbers = #tpu.dot_dimension_numbers<[1], [0], [0], [1], [0, 0, 1, 1], [], []>} : vector<2x4xf32>, vector<4x128xf32>, vector<2x128xf32> -> vector<2x128xf32>
    %285 = arith.addf %279, %284 : vector<2x128xf32>
    %286 = vector.extract_strided_slice %249 {offsets = [0, 12, 0], sizes = [2, 1, 4], strides = [1, 1, 1]} : vector<2x14x4xf32> to vector<2x1x4xf32>
    %287 = vector.shape_cast %286 : vector<2x1x4xf32> to vector<2x4xf32>
    %c34 = arith.constant 34 : index
    %c0_111 = arith.constant 0 : index
    %c0_112 = arith.constant 0 : index
    %288 = vector.load %arg2[%c34, %c0_111, %c0_112] : memref<49x4x128xf32, #tpu.memory_space<vmem>>, vector<1x4x128xf32>
    %289 = vector.shape_cast %288 : vector<1x4x128xf32> to vector<4x128xf32>
    %cst_113 = arith.constant dense<0.000000e+00> : vector<2x128xf32>
    %290 = tpu.matmul %287, %289, %cst_113 {dimension_numbers = #tpu.dot_dimension_numbers<[1], [0], [0], [1], [0, 0, 1, 1], [], []>} : vector<2x4xf32>, vector<4x128xf32>, vector<2x128xf32> -> vector<2x128xf32>
    %291 = arith.addf %285, %290 : vector<2x128xf32>
    %292 = vector.extract_strided_slice %0 {offsets = [0, 10, 0, 0], sizes = [2, 3, 16, 4], strides = [1, 1, 1, 1]} : vector<2x16x16x4xf32> to vector<2x3x16x4xf32>
    %293 = vector.extract_strided_slice %292 {offsets = [0, 0, 0, 0], sizes = [2, 1, 16, 4], strides = [1, 1, 1, 1]} : vector<2x3x16x4xf32> to vector<2x1x16x4xf32>
    %294 = vector.shape_cast %293 : vector<2x1x16x4xf32> to vector<2x16x4xf32>
    %295 = vector.extract_strided_slice %292 {offsets = [0, 1, 0, 0], sizes = [2, 1, 16, 4], strides = [1, 1, 1, 1]} : vector<2x3x16x4xf32> to vector<2x1x16x4xf32>
    %296 = vector.shape_cast %295 : vector<2x1x16x4xf32> to vector<2x16x4xf32>
    %297 = arith.maximumf %294, %296 : vector<2x16x4xf32>
    %298 = vector.extract_strided_slice %292 {offsets = [0, 2, 0, 0], sizes = [2, 1, 16, 4], strides = [1, 1, 1, 1]} : vector<2x3x16x4xf32> to vector<2x1x16x4xf32>
    %299 = vector.shape_cast %298 : vector<2x1x16x4xf32> to vector<2x16x4xf32>
    %300 = arith.maximumf %297, %299 : vector<2x16x4xf32>
    %301 = vector.extract_strided_slice %300 {offsets = [0, 0, 0], sizes = [2, 14, 4], strides = [1, 1, 1]} : vector<2x16x4xf32> to vector<2x14x4xf32>
    %302 = vector.extract_strided_slice %300 {offsets = [0, 1, 0], sizes = [2, 14, 4], strides = [1, 1, 1]} : vector<2x16x4xf32> to vector<2x14x4xf32>
    %303 = arith.maximumf %301, %302 : vector<2x14x4xf32>
    %304 = vector.extract_strided_slice %300 {offsets = [0, 2, 0], sizes = [2, 14, 4], strides = [1, 1, 1]} : vector<2x16x4xf32> to vector<2x14x4xf32>
    %305 = arith.maximumf %303, %304 : vector<2x14x4xf32>
    %cst_114 = arith.constant 0.000000e+00 : f32
    %306 = vector.broadcast %cst_114 : f32 to vector<2x14x4xf32>
    %307 = arith.maximumf %305, %306 : vector<2x14x4xf32>
    %308 = vector.extract_strided_slice %307 {offsets = [0, 0, 0], sizes = [2, 1, 4], strides = [1, 1, 1]} : vector<2x14x4xf32> to vector<2x1x4xf32>
    %309 = vector.shape_cast %308 : vector<2x1x4xf32> to vector<2x4xf32>
    %c35 = arith.constant 35 : index
    %c0_115 = arith.constant 0 : index
    %c0_116 = arith.constant 0 : index
    %310 = vector.load %arg2[%c35, %c0_115, %c0_116] : memref<49x4x128xf32, #tpu.memory_space<vmem>>, vector<1x4x128xf32>
    %311 = vector.shape_cast %310 : vector<1x4x128xf32> to vector<4x128xf32>
    %cst_117 = arith.constant dense<0.000000e+00> : vector<2x128xf32>
    %312 = tpu.matmul %309, %311, %cst_117 {dimension_numbers = #tpu.dot_dimension_numbers<[1], [0], [0], [1], [0, 0, 1, 1], [], []>} : vector<2x4xf32>, vector<4x128xf32>, vector<2x128xf32> -> vector<2x128xf32>
    %313 = arith.addf %291, %312 : vector<2x128xf32>
    %314 = vector.extract_strided_slice %307 {offsets = [0, 2, 0], sizes = [2, 1, 4], strides = [1, 1, 1]} : vector<2x14x4xf32> to vector<2x1x4xf32>
    %315 = vector.shape_cast %314 : vector<2x1x4xf32> to vector<2x4xf32>
    %c36 = arith.constant 36 : index
    %c0_118 = arith.constant 0 : index
    %c0_119 = arith.constant 0 : index
    %316 = vector.load %arg2[%c36, %c0_118, %c0_119] : memref<49x4x128xf32, #tpu.memory_space<vmem>>, vector<1x4x128xf32>
    %317 = vector.shape_cast %316 : vector<1x4x128xf32> to vector<4x128xf32>
    %cst_120 = arith.constant dense<0.000000e+00> : vector<2x128xf32>
    %318 = tpu.matmul %315, %317, %cst_120 {dimension_numbers = #tpu.dot_dimension_numbers<[1], [0], [0], [1], [0, 0, 1, 1], [], []>} : vector<2x4xf32>, vector<4x128xf32>, vector<2x128xf32> -> vector<2x128xf32>
    %319 = arith.addf %313, %318 : vector<2x128xf32>
    %320 = vector.extract_strided_slice %307 {offsets = [0, 4, 0], sizes = [2, 1, 4], strides = [1, 1, 1]} : vector<2x14x4xf32> to vector<2x1x4xf32>
    %321 = vector.shape_cast %320 : vector<2x1x4xf32> to vector<2x4xf32>
    %c37 = arith.constant 37 : index
    %c0_121 = arith.constant 0 : index
    %c0_122 = arith.constant 0 : index
    %322 = vector.load %arg2[%c37, %c0_121, %c0_122] : memref<49x4x128xf32, #tpu.memory_space<vmem>>, vector<1x4x128xf32>
    %323 = vector.shape_cast %322 : vector<1x4x128xf32> to vector<4x128xf32>
    %cst_123 = arith.constant dense<0.000000e+00> : vector<2x128xf32>
    %324 = tpu.matmul %321, %323, %cst_123 {dimension_numbers = #tpu.dot_dimension_numbers<[1], [0], [0], [1], [0, 0, 1, 1], [], []>} : vector<2x4xf32>, vector<4x128xf32>, vector<2x128xf32> -> vector<2x128xf32>
    %325 = arith.addf %319, %324 : vector<2x128xf32>
    %326 = vector.extract_strided_slice %307 {offsets = [0, 6, 0], sizes = [2, 1, 4], strides = [1, 1, 1]} : vector<2x14x4xf32> to vector<2x1x4xf32>
    %327 = vector.shape_cast %326 : vector<2x1x4xf32> to vector<2x4xf32>
    %c38 = arith.constant 38 : index
    %c0_124 = arith.constant 0 : index
    %c0_125 = arith.constant 0 : index
    %328 = vector.load %arg2[%c38, %c0_124, %c0_125] : memref<49x4x128xf32, #tpu.memory_space<vmem>>, vector<1x4x128xf32>
    %329 = vector.shape_cast %328 : vector<1x4x128xf32> to vector<4x128xf32>
    %cst_126 = arith.constant dense<0.000000e+00> : vector<2x128xf32>
    %330 = tpu.matmul %327, %329, %cst_126 {dimension_numbers = #tpu.dot_dimension_numbers<[1], [0], [0], [1], [0, 0, 1, 1], [], []>} : vector<2x4xf32>, vector<4x128xf32>, vector<2x128xf32> -> vector<2x128xf32>
    %331 = arith.addf %325, %330 : vector<2x128xf32>
    %332 = vector.extract_strided_slice %307 {offsets = [0, 8, 0], sizes = [2, 1, 4], strides = [1, 1, 1]} : vector<2x14x4xf32> to vector<2x1x4xf32>
    %333 = vector.shape_cast %332 : vector<2x1x4xf32> to vector<2x4xf32>
    %c39 = arith.constant 39 : index
    %c0_127 = arith.constant 0 : index
    %c0_128 = arith.constant 0 : index
    %334 = vector.load %arg2[%c39, %c0_127, %c0_128] : memref<49x4x128xf32, #tpu.memory_space<vmem>>, vector<1x4x128xf32>
    %335 = vector.shape_cast %334 : vector<1x4x128xf32> to vector<4x128xf32>
    %cst_129 = arith.constant dense<0.000000e+00> : vector<2x128xf32>
    %336 = tpu.matmul %333, %335, %cst_129 {dimension_numbers = #tpu.dot_dimension_numbers<[1], [0], [0], [1], [0, 0, 1, 1], [], []>} : vector<2x4xf32>, vector<4x128xf32>, vector<2x128xf32> -> vector<2x128xf32>
    %337 = arith.addf %331, %336 : vector<2x128xf32>
    %338 = vector.extract_strided_slice %307 {offsets = [0, 10, 0], sizes = [2, 1, 4], strides = [1, 1, 1]} : vector<2x14x4xf32> to vector<2x1x4xf32>
    %339 = vector.shape_cast %338 : vector<2x1x4xf32> to vector<2x4xf32>
    %c40 = arith.constant 40 : index
    %c0_130 = arith.constant 0 : index
    %c0_131 = arith.constant 0 : index
    %340 = vector.load %arg2[%c40, %c0_130, %c0_131] : memref<49x4x128xf32, #tpu.memory_space<vmem>>, vector<1x4x128xf32>
    %341 = vector.shape_cast %340 : vector<1x4x128xf32> to vector<4x128xf32>
    %cst_132 = arith.constant dense<0.000000e+00> : vector<2x128xf32>
    %342 = tpu.matmul %339, %341, %cst_132 {dimension_numbers = #tpu.dot_dimension_numbers<[1], [0], [0], [1], [0, 0, 1, 1], [], []>} : vector<2x4xf32>, vector<4x128xf32>, vector<2x128xf32> -> vector<2x128xf32>
    %343 = arith.addf %337, %342 : vector<2x128xf32>
    %344 = vector.extract_strided_slice %307 {offsets = [0, 12, 0], sizes = [2, 1, 4], strides = [1, 1, 1]} : vector<2x14x4xf32> to vector<2x1x4xf32>
    %345 = vector.shape_cast %344 : vector<2x1x4xf32> to vector<2x4xf32>
    %c41 = arith.constant 41 : index
    %c0_133 = arith.constant 0 : index
    %c0_134 = arith.constant 0 : index
    %346 = vector.load %arg2[%c41, %c0_133, %c0_134] : memref<49x4x128xf32, #tpu.memory_space<vmem>>, vector<1x4x128xf32>
    %347 = vector.shape_cast %346 : vector<1x4x128xf32> to vector<4x128xf32>
    %cst_135 = arith.constant dense<0.000000e+00> : vector<2x128xf32>
    %348 = tpu.matmul %345, %347, %cst_135 {dimension_numbers = #tpu.dot_dimension_numbers<[1], [0], [0], [1], [0, 0, 1, 1], [], []>} : vector<2x4xf32>, vector<4x128xf32>, vector<2x128xf32> -> vector<2x128xf32>
    %349 = arith.addf %343, %348 : vector<2x128xf32>
    %350 = vector.extract_strided_slice %0 {offsets = [0, 12, 0, 0], sizes = [2, 3, 16, 4], strides = [1, 1, 1, 1]} : vector<2x16x16x4xf32> to vector<2x3x16x4xf32>
    %351 = vector.extract_strided_slice %350 {offsets = [0, 0, 0, 0], sizes = [2, 1, 16, 4], strides = [1, 1, 1, 1]} : vector<2x3x16x4xf32> to vector<2x1x16x4xf32>
    %352 = vector.shape_cast %351 : vector<2x1x16x4xf32> to vector<2x16x4xf32>
    %353 = vector.extract_strided_slice %350 {offsets = [0, 1, 0, 0], sizes = [2, 1, 16, 4], strides = [1, 1, 1, 1]} : vector<2x3x16x4xf32> to vector<2x1x16x4xf32>
    %354 = vector.shape_cast %353 : vector<2x1x16x4xf32> to vector<2x16x4xf32>
    %355 = arith.maximumf %352, %354 : vector<2x16x4xf32>
    %356 = vector.extract_strided_slice %350 {offsets = [0, 2, 0, 0], sizes = [2, 1, 16, 4], strides = [1, 1, 1, 1]} : vector<2x3x16x4xf32> to vector<2x1x16x4xf32>
    %357 = vector.shape_cast %356 : vector<2x1x16x4xf32> to vector<2x16x4xf32>
    %358 = arith.maximumf %355, %357 : vector<2x16x4xf32>
    %359 = vector.extract_strided_slice %358 {offsets = [0, 0, 0], sizes = [2, 14, 4], strides = [1, 1, 1]} : vector<2x16x4xf32> to vector<2x14x4xf32>
    %360 = vector.extract_strided_slice %358 {offsets = [0, 1, 0], sizes = [2, 14, 4], strides = [1, 1, 1]} : vector<2x16x4xf32> to vector<2x14x4xf32>
    %361 = arith.maximumf %359, %360 : vector<2x14x4xf32>
    %362 = vector.extract_strided_slice %358 {offsets = [0, 2, 0], sizes = [2, 14, 4], strides = [1, 1, 1]} : vector<2x16x4xf32> to vector<2x14x4xf32>
    %363 = arith.maximumf %361, %362 : vector<2x14x4xf32>
    %cst_136 = arith.constant 0.000000e+00 : f32
    %364 = vector.broadcast %cst_136 : f32 to vector<2x14x4xf32>
    %365 = arith.maximumf %363, %364 : vector<2x14x4xf32>
    %366 = vector.extract_strided_slice %365 {offsets = [0, 0, 0], sizes = [2, 1, 4], strides = [1, 1, 1]} : vector<2x14x4xf32> to vector<2x1x4xf32>
    %367 = vector.shape_cast %366 : vector<2x1x4xf32> to vector<2x4xf32>
    %c42 = arith.constant 42 : index
    %c0_137 = arith.constant 0 : index
    %c0_138 = arith.constant 0 : index
    %368 = vector.load %arg2[%c42, %c0_137, %c0_138] : memref<49x4x128xf32, #tpu.memory_space<vmem>>, vector<1x4x128xf32>
    %369 = vector.shape_cast %368 : vector<1x4x128xf32> to vector<4x128xf32>
    %cst_139 = arith.constant dense<0.000000e+00> : vector<2x128xf32>
    %370 = tpu.matmul %367, %369, %cst_139 {dimension_numbers = #tpu.dot_dimension_numbers<[1], [0], [0], [1], [0, 0, 1, 1], [], []>} : vector<2x4xf32>, vector<4x128xf32>, vector<2x128xf32> -> vector<2x128xf32>
    %371 = arith.addf %349, %370 : vector<2x128xf32>
    %372 = vector.extract_strided_slice %365 {offsets = [0, 2, 0], sizes = [2, 1, 4], strides = [1, 1, 1]} : vector<2x14x4xf32> to vector<2x1x4xf32>
    %373 = vector.shape_cast %372 : vector<2x1x4xf32> to vector<2x4xf32>
    %c43 = arith.constant 43 : index
    %c0_140 = arith.constant 0 : index
    %c0_141 = arith.constant 0 : index
    %374 = vector.load %arg2[%c43, %c0_140, %c0_141] : memref<49x4x128xf32, #tpu.memory_space<vmem>>, vector<1x4x128xf32>
    %375 = vector.shape_cast %374 : vector<1x4x128xf32> to vector<4x128xf32>
    %cst_142 = arith.constant dense<0.000000e+00> : vector<2x128xf32>
    %376 = tpu.matmul %373, %375, %cst_142 {dimension_numbers = #tpu.dot_dimension_numbers<[1], [0], [0], [1], [0, 0, 1, 1], [], []>} : vector<2x4xf32>, vector<4x128xf32>, vector<2x128xf32> -> vector<2x128xf32>
    %377 = arith.addf %371, %376 : vector<2x128xf32>
    %378 = vector.extract_strided_slice %365 {offsets = [0, 4, 0], sizes = [2, 1, 4], strides = [1, 1, 1]} : vector<2x14x4xf32> to vector<2x1x4xf32>
    %379 = vector.shape_cast %378 : vector<2x1x4xf32> to vector<2x4xf32>
    %c44 = arith.constant 44 : index
    %c0_143 = arith.constant 0 : index
    %c0_144 = arith.constant 0 : index
    %380 = vector.load %arg2[%c44, %c0_143, %c0_144] : memref<49x4x128xf32, #tpu.memory_space<vmem>>, vector<1x4x128xf32>
    %381 = vector.shape_cast %380 : vector<1x4x128xf32> to vector<4x128xf32>
    %cst_145 = arith.constant dense<0.000000e+00> : vector<2x128xf32>
    %382 = tpu.matmul %379, %381, %cst_145 {dimension_numbers = #tpu.dot_dimension_numbers<[1], [0], [0], [1], [0, 0, 1, 1], [], []>} : vector<2x4xf32>, vector<4x128xf32>, vector<2x128xf32> -> vector<2x128xf32>
    %383 = arith.addf %377, %382 : vector<2x128xf32>
    %384 = vector.extract_strided_slice %365 {offsets = [0, 6, 0], sizes = [2, 1, 4], strides = [1, 1, 1]} : vector<2x14x4xf32> to vector<2x1x4xf32>
    %385 = vector.shape_cast %384 : vector<2x1x4xf32> to vector<2x4xf32>
    %c45 = arith.constant 45 : index
    %c0_146 = arith.constant 0 : index
    %c0_147 = arith.constant 0 : index
    %386 = vector.load %arg2[%c45, %c0_146, %c0_147] : memref<49x4x128xf32, #tpu.memory_space<vmem>>, vector<1x4x128xf32>
    %387 = vector.shape_cast %386 : vector<1x4x128xf32> to vector<4x128xf32>
    %cst_148 = arith.constant dense<0.000000e+00> : vector<2x128xf32>
    %388 = tpu.matmul %385, %387, %cst_148 {dimension_numbers = #tpu.dot_dimension_numbers<[1], [0], [0], [1], [0, 0, 1, 1], [], []>} : vector<2x4xf32>, vector<4x128xf32>, vector<2x128xf32> -> vector<2x128xf32>
    %389 = arith.addf %383, %388 : vector<2x128xf32>
    %390 = vector.extract_strided_slice %365 {offsets = [0, 8, 0], sizes = [2, 1, 4], strides = [1, 1, 1]} : vector<2x14x4xf32> to vector<2x1x4xf32>
    %391 = vector.shape_cast %390 : vector<2x1x4xf32> to vector<2x4xf32>
    %c46 = arith.constant 46 : index
    %c0_149 = arith.constant 0 : index
    %c0_150 = arith.constant 0 : index
    %392 = vector.load %arg2[%c46, %c0_149, %c0_150] : memref<49x4x128xf32, #tpu.memory_space<vmem>>, vector<1x4x128xf32>
    %393 = vector.shape_cast %392 : vector<1x4x128xf32> to vector<4x128xf32>
    %cst_151 = arith.constant dense<0.000000e+00> : vector<2x128xf32>
    %394 = tpu.matmul %391, %393, %cst_151 {dimension_numbers = #tpu.dot_dimension_numbers<[1], [0], [0], [1], [0, 0, 1, 1], [], []>} : vector<2x4xf32>, vector<4x128xf32>, vector<2x128xf32> -> vector<2x128xf32>
    %395 = arith.addf %389, %394 : vector<2x128xf32>
    %396 = vector.extract_strided_slice %365 {offsets = [0, 10, 0], sizes = [2, 1, 4], strides = [1, 1, 1]} : vector<2x14x4xf32> to vector<2x1x4xf32>
    %397 = vector.shape_cast %396 : vector<2x1x4xf32> to vector<2x4xf32>
    %c47 = arith.constant 47 : index
    %c0_152 = arith.constant 0 : index
    %c0_153 = arith.constant 0 : index
    %398 = vector.load %arg2[%c47, %c0_152, %c0_153] : memref<49x4x128xf32, #tpu.memory_space<vmem>>, vector<1x4x128xf32>
    %399 = vector.shape_cast %398 : vector<1x4x128xf32> to vector<4x128xf32>
    %cst_154 = arith.constant dense<0.000000e+00> : vector<2x128xf32>
    %400 = tpu.matmul %397, %399, %cst_154 {dimension_numbers = #tpu.dot_dimension_numbers<[1], [0], [0], [1], [0, 0, 1, 1], [], []>} : vector<2x4xf32>, vector<4x128xf32>, vector<2x128xf32> -> vector<2x128xf32>
    %401 = arith.addf %395, %400 : vector<2x128xf32>
    %402 = vector.extract_strided_slice %365 {offsets = [0, 12, 0], sizes = [2, 1, 4], strides = [1, 1, 1]} : vector<2x14x4xf32> to vector<2x1x4xf32>
    %403 = vector.shape_cast %402 : vector<2x1x4xf32> to vector<2x4xf32>
    %c48 = arith.constant 48 : index
    %c0_155 = arith.constant 0 : index
    %c0_156 = arith.constant 0 : index
    %404 = vector.load %arg2[%c48, %c0_155, %c0_156] : memref<49x4x128xf32, #tpu.memory_space<vmem>>, vector<1x4x128xf32>
    %405 = vector.shape_cast %404 : vector<1x4x128xf32> to vector<4x128xf32>
    %cst_157 = arith.constant dense<0.000000e+00> : vector<2x128xf32>
    %406 = tpu.matmul %403, %405, %cst_157 {dimension_numbers = #tpu.dot_dimension_numbers<[1], [0], [0], [1], [0, 0, 1, 1], [], []>} : vector<2x4xf32>, vector<4x128xf32>, vector<2x128xf32> -> vector<2x128xf32>
    %407 = arith.addf %401, %406 : vector<2x128xf32>
    %c0_158 = arith.constant 0 : index
    %c0_159 = arith.constant 0 : index
    %408 = vector.load %arg3[%c0_158, %c0_159] : memref<1x128xf32, #tpu.memory_space<vmem>>, vector<1x128xf32>
    %409 = vector.broadcast %408 : vector<1x128xf32> to vector<2x128xf32>
    %410 = arith.addf %407, %409 : vector<2x128xf32>
    %cst_160 = arith.constant 0.000000e+00 : f32
    %411 = vector.broadcast %cst_160 : f32 to vector<2x128xf32>
    %412 = arith.maximumf %410, %411 : vector<2x128xf32>
    %c0_161 = arith.constant 0 : index
    %c0_162 = arith.constant 0 : index
    %413 = vector.load %arg4[%c0_161, %c0_162] : memref<128x128xf32, #tpu.memory_space<vmem>>, vector<128x128xf32>
    %cst_163 = arith.constant dense<0.000000e+00> : vector<2x128xf32>
    %414 = tpu.matmul %412, %413, %cst_163 {dimension_numbers = #tpu.dot_dimension_numbers<[1], [0], [0], [1], [0, 0, 1, 1], [], []>} : vector<2x128xf32>, vector<128x128xf32>, vector<2x128xf32> -> vector<2x128xf32>
    %c0_164 = arith.constant 0 : index
    %c0_165 = arith.constant 0 : index
    %415 = vector.load %arg5[%c0_164, %c0_165] : memref<1x128xf32, #tpu.memory_space<vmem>>, vector<1x128xf32>
    %416 = vector.broadcast %415 : vector<1x128xf32> to vector<2x128xf32>
    %417 = arith.addf %414, %416 : vector<2x128xf32>
    %cst_166 = arith.constant 0.000000e+00 : f32
    %418 = vector.broadcast %cst_166 : f32 to vector<2x128xf32>
    %419 = arith.maximumf %417, %418 : vector<2x128xf32>
    %c0_167 = arith.constant 0 : index
    %c0_168 = arith.constant 0 : index
    %420 = vector.load %arg6[%c0_167, %c0_168] : memref<128x128xf32, #tpu.memory_space<vmem>>, vector<128x128xf32>
    %cst_169 = arith.constant dense<0.000000e+00> : vector<2x128xf32>
    %421 = tpu.matmul %419, %420, %cst_169 {dimension_numbers = #tpu.dot_dimension_numbers<[1], [0], [0], [1], [0, 0, 1, 1], [], []>} : vector<2x128xf32>, vector<128x128xf32>, vector<2x128xf32> -> vector<2x128xf32>
    %c0_170 = arith.constant 0 : index
    %c0_171 = arith.constant 0 : index
    %422 = vector.load %arg7[%c0_170, %c0_171] : memref<1x128xf32, #tpu.memory_space<vmem>>, vector<1x128xf32>
    %423 = vector.broadcast %422 : vector<1x128xf32> to vector<2x128xf32>
    %424 = arith.addf %421, %423 : vector<2x128xf32>
    %c0_172 = arith.constant 0 : index
    %c0_173 = arith.constant 0 : index
    %425 = vector.load %arg8[%c0_172, %c0_173] : memref<2x128xf32, #tpu.memory_space<vmem>>, vector<2x128xf32>
    tpu.vector_store %arg8[%c0_172, %c0_173], %424 {strides = array<i32>} : memref<2x128xf32, #tpu.memory_space<vmem>>, vector<2x128xf32>,
    return
  }
  func.func @transform_0(%arg0: i32) -> (i32, i32, i32, i32) {
    %c0_i32 = arith.constant 0 : i32
    %c0_i32_0 = arith.constant 0 : i32
    %c0_i32_1 = arith.constant 0 : i32
    %c0_i32_2 = arith.constant 0 : i32
    return %arg0, %c0_i32, %c0_i32_0, %c0_i32_1 : i32, i32, i32, i32
  }
  func.func @transform_1(%arg0: i32) -> (i32, i32, i32) {
    %c0_i32 = arith.constant 0 : i32
    %c0_i32_0 = arith.constant 0 : i32
    %c0_i32_1 = arith.constant 0 : i32
    %c0_i32_2 = arith.constant 0 : i32
    return %c0_i32, %c0_i32_0, %c0_i32_1 : i32, i32, i32
  }
  func.func @transform_2(%arg0: i32) -> (i32, i32) {
    %c0_i32 = arith.constant 0 : i32
    %c0_i32_0 = arith.constant 0 : i32
    %c0_i32_1 = arith.constant 0 : i32
    return %c0_i32, %c0_i32_0 : i32, i32
  }
  func.func @transform_3(%arg0: i32) -> (i32, i32) {
    %c0_i32 = arith.constant 0 : i32
    %c0_i32_0 = arith.constant 0 : i32
    %c0_i32_1 = arith.constant 0 : i32
    return %c0_i32, %c0_i32_0 : i32, i32
  }
  func.func @transform_4(%arg0: i32) -> (i32, i32) {
    %c0_i32 = arith.constant 0 : i32
    %c0_i32_0 = arith.constant 0 : i32
    %c0_i32_1 = arith.constant 0 : i32
    return %c0_i32, %c0_i32_0 : i32, i32
  }
  func.func @transform_5(%arg0: i32) -> (i32, i32) {
    %c0_i32 = arith.constant 0 : i32
    %c0_i32_0 = arith.constant 0 : i32
    %c0_i32_1 = arith.constant 0 : i32
    return %c0_i32, %c0_i32_0 : i32, i32
  }
  func.func @transform_6(%arg0: i32) -> (i32, i32) {
    %c0_i32 = arith.constant 0 : i32
    %c0_i32_0 = arith.constant 0 : i32
    %c0_i32_1 = arith.constant 0 : i32
    return %c0_i32, %c0_i32_0 : i32, i32
  }
  func.func @transform_7(%arg0: i32) -> (i32, i32) {
    %c0_i32 = arith.constant 0 : i32
    %c0_i32_0 = arith.constant 0 : i32
    return %arg0, %c0_i32 : i32, i32
  }
}

</mosaic_0001>

<bundles_post_ra>
// kernel: model_part_forward.1
= control target key start
LH: loop header
LB: loop body
LE: loop exit
PB: predicated region body
PF: predicated region fallthrough
CT: control target
= control target key end

     0   :  { %vm145_vm0 = vcmask 1043456   ;;  %v5212_v2 = vmov 0.0   ;;  %vm5213_vm1 = vmmov 0   ;;  %vm99_vm2 = vcmask 1046528   ;;  %s6309_s0 = inlined_call_operand.vmem [shape: f32[2,16,16,4], index: 0, kind: input, shape index: {}]   ;;  %s6310_s1 = inlined_call_operand.vmem [shape: f32[49,4,128], index: 1, kind: input, shape index: {}]   ;;  %s6311_s2 = inlined_call_operand.vmem [shape: f32[1,128], index: 2, kind: input, shape index: {}]   ;;  %s6312_s3 = inlined_call_operand.vmem [shape: f32[128,128], index: 3, kind: input, shape index: {}]   ;;  %s6313_s4 = inlined_call_operand.vmem [shape: f32[1,128], index: 4, kind: input, shape index: {}]   ;;  %s6314_s5 = inlined_call_operand.vmem [shape: f32[128,128], index: 5, kind: input, shape index: {}]   ;;  %s6315_s6 = inlined_call_operand.vmem [shape: f32[1,128], index: 6, kind: input, shape index: {}]   ;;  %s6316_s7 = inlined_call_operand.hbm [shape: f32[2,128], index: 7, kind: output, shape index: {}]  }
   0x1   :  { %v4591_v0 = vld [vmem:[%s6310_s1 + $0x4] sm:$0xf]  ;;  %4872 = vmatprep.subr.mxu0 %v5212_v2  ;;  %4877 = vmatprep.subr.mxu1 %v5212_v2  ;;  %v133_v3 = vld [vmem:[%s6310_s1] sm:$0xf]  ;;  %v28_v4 = vld [vmem:[%s6309_s0 + $0x8] sm:$0xff]  ;;  %vm114_vm3 = vcmask 1045504  }
   0x2   :  { %v27_v1 = vld [vmem:[%s6309_s0] sm:$0xff]  ;;  %v29_v5 = vld [vmem:[%s6309_s0 + $0x10] sm:$0xff]  ;;  %4873 = vmatpush3.msk.msra.mxu0 %vm145_vm0, %v4591_v0  ;;  %4874 = vmatprep.mubr.msk.f32.mxu0 %vm5213_vm1, %v5212_v2  ;;  %v30_v6 = vld [vmem:[%s6309_s0 + $0x18] sm:$0xff]  ;;  %vm140_vm4 = vcmask 1041409   ;;  %vm142_vm5 = vcmask 31744  }
   0x3   :  { %v31_v7 = vld [vmem:[%s6309_s0 + $0x20] sm:$0xff]  ;;  %v32_v8 = vld [vmem:[%s6309_s0 + $0x28] sm:$0xff]  ;;  %v87_v9 = vmax.f32 %v27_v1, %v29_v5  ;;  %4878 = vmatpush3.msk.msra.mxu1 %vm145_vm0, %v133_v3  ;;  %4879 = vmatprep.mubr.msk.f32.mxu1 %vm5213_vm1, %v5212_v2  ;;  %v59_v12 = vld [vmem:[%s6309_s0 + $0x110] sm:$0xff]  ;;  %v88_v13 = vmax.f32 %v28_v4, %v30_v6 }
   0x4   :  { %v57_v10 = vld [vmem:[%s6309_s0 + $0x100] sm:$0xff]  ;;  %v58_v11 = vld [vmem:[%s6309_s0 + $0x108] sm:$0xff]  ;;  %4882 = vmatprep.subr.mxu0 %v5212_v2  ;;  %v60_v14 = vld [vmem:[%s6309_s0 + $0x118] sm:$0xff]  ;;  %4887 = vmatprep.subr.mxu1 %v5212_v2 }
   0x5   :  { %v61_v15 = vld [vmem:[%s6309_s0 + $0x120] sm:$0xff]  ;;  %v62_v16 = vld [vmem:[%s6309_s0 + $0x128] sm:$0xff]  ;;  %v89_v17 = vmax.f32 %v57_v10, %v59_v12  ;;  %v91_v18 = vmax.f32 %v87_v9, %v31_v7  ;;  %v63_v19 = vld [vmem:[%s6309_s0 + $0x130] sm:$0xff]  ;;  %v90_v21 = vmax.f32 %v58_v11, %v60_v14  ;;  %v92_v22 = vmax.f32 %v88_v13, %v32_v8 }
   0x6   :  { %v64_v20 = vld [vmem:[%s6309_s0 + $0x138] sm:$0xff]  ;;  %v704_v29 = vmax.f32 %v61_v15, %v63_v19  ;;  %v33_v33 = vld [vmem:[%s6309_s0 + $0x30] sm:$0xff]  ;;  %v5324_v39 = vld [vmem:[%s6309_s0 + $0x40] sm:$0xff] }
   0x7   :  { %v93_v23 = vmax.f32 %v89_v17, %v61_v15  ;;  %v100_v24 = vrot.slane %v91_v18, 1  ;;  %v115_v25 = vrot.slane %v91_v18, 2  ;;  %v94_v26 = vmax.f32 %v90_v21, %v62_v16  ;;  %v34_v34 = vld [vmem:[%s6309_s0 + $0x38] sm:$0xff]  ;;  %v5329_v40 = vld [vmem:[%s6309_s0 + $0x140] sm:$0xff]  ;;  %v5334_v43 = vld [vmem:[%s6309_s0 + $0x48] sm:$0xff] }
   0x8   :  { %v101_v27 = vrot.slane %v92_v22, 1  ;;  %v116_v28 = vrot.slane %v92_v22, 2  ;;  %v705_v32 = vmax.f32 %v62_v16, %v64_v20  ;;  %v5339_v44 = vld [vmem:[%s6309_s0 + $0x148] sm:$0xff]  ;;  %v702_v45 = vmax.f32 %v31_v7, %v33_v33  ;;  %v4602_v33 = vld [vmem:[%s6310_s1 + $0x10] sm:$0xf] }
   0x9   :  { %v103_v30 = vrot.slane %v93_v23, 1  ;;  %v118_v31 = vrot.slane %v93_v23, 2  ;;  %v104_v36 = vrot.slane %v94_v26, 1  ;;  %v119_v38 = vrot.slane %v94_v26, 2  ;;  %v4596_v14 = vld [vmem:[%s6310_s1 + $0x8] sm:$0xf] }
   0xa   :  { %v102_v35 = vsel %vm99_vm2, %v100_v24, %v101_v27  ;;  %v117_v37 = vsel %vm114_vm3, %v115_v25, %v116_v28  ;;  %v111_v42 = vmax.f32 %v92_v22, %v101_v27  ;;  %v703_v46 = vmax.f32 %v32_v8, %v34_v34  ;;  %v4599_v15 = vld [vmem:[%s6310_s1 + $0xc] sm:$0xf]  ;;  %v4605_v34 = vld [vmem:[%s6310_s1 + $0x14] sm:$0xf] }
   0xb   :  { %v110_v41 = vmax.f32 %v91_v18, %v102_v35  ;;  %v105_v47 = vsel %vm99_vm2, %v103_v30, %v104_v36  ;;  %v120_v48 = vsel %vm114_vm3, %v118_v31, %v119_v38  ;;  %v113_v49 = vmax.f32 %v94_v26, %v104_v36 }
   0xc   :  { %v5344_v50 = vmax.f32 %v704_v29, %v5329_v40  ;;  %v112_v51 = vmax.f32 %v93_v23, %v105_v47  ;;  %v126_v53 = vmax.f32 %v111_v42, %v116_v28  ;;  %v706_v54 = vmax.f32 %v702_v45, %v5324_v39  ;;  %v37_v23 = vld [vmem:[%s6309_s0 + $0x50] sm:$0xff]  ;;  %v68_v47 = vld [vmem:[%s6309_s0 + $0x158] sm:$0xff] }
   0xd   :  { %v125_v52 = vmax.f32 %v110_v41, %v117_v37  ;;  %v128_v55 = vmax.f32 %v113_v49, %v119_v38  ;;  %v707_v56 = vmax.f32 %v703_v46, %v5334_v43  ;;  %v5349_v57 = vmax.f32 %v705_v32, %v5339_v44  ;;  %v38_v32 = vld [vmem:[%s6309_s0 + $0x58] sm:$0xff]  ;;  %v5405_v37 = vld [vmem:[%s6309_s0 + $0x150] sm:$0xff]  ;;  %v5414_v46 = vld [vmem:[%s6309_s0 + $0x60] sm:$0xff] }
   0xe   :  { %v127_v58 = vmax.f32 %v112_v51, %v120_v48  ;;  %v5351_v60 = vmax.f32 %v126_v53, 0.0  ;;  %v714_v62 = vrot.slane %v706_v54, 1  ;;  %v717_v0 = vrot.slane %v5344_v50, 1 }
   0xf   :  { %v129_v59 = vmax.f32 %v125_v52, 0.0  ;;  %v5353_v61 = vmax.f32 %v128_v55, 0.0  ;;  %v715_v63 = vrot.slane %v707_v56, 1  ;;  %v718_v5 = vrot.slane %v5349_v57, 1 }
  0x10   :  { %v131_v1 = vmax.f32 %v127_v58, 0.0  ;;  %v542_v8 = vrot.slane %v5351_v60, 2  ;;  %v728_v18 = vrot.slane %v706_v54, 2  ;;  %v729_v27 = vrot.slane %v707_v56, 2 }
  0x11   :  { %v138_v3 = vrot.slane %v129_v59, 2  ;;  %v298_v4 = vrot.slane %v129_v59, 4  ;;  %v379_v6 = vrot.slane %v129_v59, 6  ;;  %v462_v7 = vrot.slane %v5353_v61, 7 }
  0x12   :  { %v543_v9 = vrot.slane %v5353_v61, 1  ;;  %v139_v10 = vrot.slane %v131_v1, 1  ;;  %v219_v11 = vrot.slane %v131_v1, 7  ;;  %v299_v12 = vrot.slane %v131_v1, 3 }
  0x13   :  { %v380_v13 = vrot.slane %v131_v1, 5  ;;  %v5368_v16 = vsel %vm140_vm4, %v462_v7, %v5351_v60  ;;  %v716_v17 = vsel %vm99_vm2, %v714_v62, %v715_v63  ;;  %v719_v25 = vsel %vm99_vm2, %v717_v0, %v718_v5 }
  0x14   :  { %v141_v19 = vsel %vm140_vm4, %v139_v10, %v138_v3  ;;  %v220_v20 = vsel %vm140_vm4, %v219_v11, %v129_v59  ;;  %v300_v21 = vsel %vm140_vm4, %v299_v12, %v298_v4  ;;  %v544_v22 = vsel %vm140_vm4, %v543_v9, %v542_v8  ;;  %v5468_v8 = vld [vmem:[%s6309_s0 + $0x160] sm:$0xff]  ;;  %v5473_v9 = vld [vmem:[%s6309_s0 + $0x168] sm:$0xff] }
  0x15   :  { %4875 = vmatmul.mubr.msk.f32.vlgmr.msra.gmra.mxu0 %vm142_vm5, %v141_v19  ;;  %4880 = vmatmul.mubr.msk.f32.vlgmr.msra.gmra.mxu1 %vm142_vm5, %v220_v20  ;;  %v381_v24 = vsel %vm140_vm4, %v380_v13, %v379_v6  ;;  %v724_v26 = vmax.f32 %v706_v54, %v716_v17  ;;  %v726_v28 = vmax.f32 %v5344_v50, %v719_v25  ;;  %v731_v29 = vrot.slane %v5344_v50, 2  ;;  %v5425_v50 = vld [vmem:[%s6309_s0 + $0x68] sm:$0xff]  ;;  %v4617_v11 = vld [vmem:[%s6310_s1 + $0x24] sm:$0xf] }
  0x16   :  { %4883 = vmatpush3.msk.msra.mxu0 %vm145_vm0, %v4596_v14  ;;  %4888 = vmatpush3.msk.msra.mxu1 %vm145_vm0, %v4599_v15  ;;  %v732_v30 = vrot.slane %v5349_v57, 2  ;;  %v725_v31 = vmax.f32 %v707_v56, %v715_v63  ;;  %v730_v35 = vsel %vm114_vm3, %v728_v18, %v729_v27  ;;  %v727_v36 = vmax.f32 %v5349_v57, %v718_v5  ;;  %v4611_v56 = vld [vmem:[%s6310_s1 + $0x1c] sm:$0xf]  ;;  %v4614_v5 = vld [vmem:[%s6310_s1 + $0x20] sm:$0xf]  ;;  %v41_v15 = vld [vmem:[%s6309_s0 + $0x70] sm:$0xff] }
  0x17   :  { %4884 = vmatprep.mubr.msk.f32.mxu0 %vm5213_vm1, %v5212_v2  ;;  %4889 = vmatprep.mubr.msk.f32.mxu1 %vm5213_vm1, %v5212_v2  ;;  %v1315_v38 = vmax.f32 %v5324_v39, %v37_v23  ;;  %v738_v42 = vmax.f32 %v724_v26, %v730_v35  ;;  %v623_v39 = vrot.slane %v5351_v60, 4  ;;  %v1316_v51 = vmax.f32 %v5334_v43, %v38_v32  ;;  %v4608_v43 = vld [vmem:[%s6310_s1 + $0x18] sm:$0xf]  ;;  %v4620_v25 = vld [vmem:[%s6310_s1 + $0x28] sm:$0xf]  ;;  %v71_v35 = vld [vmem:[%s6309_s0 + $0x170] sm:$0xff] }
  0x18   :  { %4892 = vmatprep.subr.mxu0 %v5212_v2  ;;  %4897 = vmatprep.subr.mxu1 %v5212_v2  ;;  %v733_v41 = vsel %vm114_vm3, %v731_v29, %v732_v30  ;;  %v739_v45 = vmax.f32 %v725_v31, %v729_v27  ;;  %v741_v49 = vmax.f32 %v727_v36, %v732_v30  ;;  %v624_v52 = vrot.slane %v5353_v61, 3  ;;  %v4623_v30 = vld [vmem:[%s6310_s1 + $0x2c] sm:$0xf] }
  0x19   :  { %4885 = vmatmul.mubr.msk.f32.vlgmr.msra.gmra.mxu0 %vm142_vm5, %v300_v21  ;;  %4890 = vmatmul.mubr.msk.f32.vlgmr.msra.gmra.mxu1 %vm142_vm5, %v381_v24  ;;  %v740_v48 = vmax.f32 %v726_v28, %v733_v41  ;;  %v742_v53 = vmax.f32 %v738_v42, 0.0  ;;  %v1317_v55 = vmax.f32 %v5329_v40, %v5405_v37  ;;  %v1318_v59 = vmax.f32 %v5339_v44, %v68_v47  ;;  %v42_v24 = vld [vmem:[%s6309_s0 + $0x78] sm:$0xff]  ;;  %v5528_v41 = vld [vmem:[%s6309_s0 + $0x80] sm:$0xff] }
  0x1a   :  { %4893 = vmatpush3.msk.msra.mxu0 %vm145_vm0, %v4602_v33  ;;  %4898 = vmatpush3.msk.msra.mxu1 %vm145_vm0, %v4605_v34  ;;  %v5431_v54 = vmax.f32 %v739_v45, 0.0  ;;  %v5445_v58 = vmax.f32 %v741_v49, 0.0  ;;  %v5449_v40 = vmax.f32 %v1315_v38, %v5414_v46  ;;  %v1320_v63 = vmax.f32 %v1316_v51, %v5425_v50  ;;  %v72_v42 = vld [vmem:[%s6309_s0 + $0x178] sm:$0xff]  ;;  %v5541_v49 = vld [vmem:[%s6309_s0 + $0x88] sm:$0xff] }
  0x1b   :  { %4894 = vmatprep.mubr.msk.f32.mxu0 %vm5213_vm1, %v5212_v2  ;;  %4899 = vmatprep.mubr.msk.f32.mxu1 %vm5213_vm1, %v5212_v2  ;;  %v744_v57 = vmax.f32 %v740_v48, 0.0  ;;  %v830_v60 = vrot.slane %v742_v53, 2  ;;  %v911_v61 = vrot.slane %v742_v53, 4  ;;  %v992_v62 = vrot.slane %v742_v53, 6 }
  0x1c   :  { %4902 = vmatprep.subr.mxu0 %v5212_v2  ;;  %4907 = vmatprep.subr.mxu1 %v5212_v2  ;;  %v625_v4 = vsel %vm140_vm4, %v624_v52, %v623_v39  ;;  %v1075_v6 = vrot.slane %v5445_v58, 7  ;;  %v1155_v7 = vrot.slane %v5431_v54, 2  ;;  %v1156_v12 = vrot.slane %v5445_v58, 1 }
  0x1d   :  { %4895 = vmatmul.mubr.msk.f32.vlgmr.msra.gmra.mxu0 %vm142_vm5, %v5368_v16  ;;  %4900 = vmatmul.mubr.msk.f32.vlgmr.msra.gmra.mxu1 %vm142_vm5, %v544_v22  ;;  %v750_v0 = vrot.slane %v744_v57, 7  ;;  %v831_v1 = vrot.slane %v744_v57, 1  ;;  %v912_v44 = vrot.slane %v744_v57, 3  ;;  %v993_v3 = vrot.slane %v744_v57, 5  ;;  %v5560_v57 = vld [vmem:[%s6309_s0 + $0x180] sm:$0xff] }
  0x1e   :  { %4903 = vmatpush3.msk.msra.mxu0 %vm145_vm0, %v4608_v43  ;;  %4908 = vmatpush3.msk.msra.mxu1 %vm145_vm0, %v4611_v56  ;;  %v1236_v13 = vrot.slane %v5431_v54, 4  ;;  %v1327_v14 = vrot.slane %v5449_v40, 1  ;;  %v1328_v19 = vrot.slane %v1320_v63, 1  ;;  %v1076_v20 = vsel %vm140_vm4, %v1075_v6, %v5431_v54 }
  0x1f   :  { %4904 = vmatprep.mubr.msk.f32.mxu0 %vm5213_vm1, %v5212_v2  ;;  %4909 = vmatprep.mubr.msk.f32.mxu1 %vm5213_vm1, %v5212_v2  ;;  %v751_v10 = vsel %vm140_vm4, %v750_v0, %v742_v53  ;;  %v832_v16 = vsel %vm140_vm4, %v831_v1, %v830_v60  ;;  %v913_v17 = vsel %vm140_vm4, %v912_v44, %v911_v61  ;;  %v1341_v23 = vrot.slane %v5449_v40, 2 }
  0x20   :  { %4912 = vmatprep.subr.mxu0 %v5212_v2  ;;  %4917 = vmatprep.subr.mxu1 %v5212_v2  ;;  %v994_v18 = vsel %vm140_vm4, %v993_v3, %v992_v62  ;;  %v1321_v21 = vmax.f32 %v1317_v55, %v5468_v8  ;;  %v1322_v22 = vmax.f32 %v1318_v59, %v5473_v9  ;;  %v1342_v27 = vrot.slane %v1320_v63, 2  ;;  %v4629_v55 = vld [vmem:[%s6310_s1 + $0x34] sm:$0xf]  ;;  %v5565_v59 = vld [vmem:[%s6309_s0 + $0x188] sm:$0xff] }
  0x21   :  { %4905 = vmatmul.mubr.msk.f32.vlgmr.msra.gmra.mxu0 %vm142_vm5, %v625_v4  ;;  %4910 = vmatmul.mubr.msk.f32.vlgmr.msra.gmra.mxu1 %vm142_vm5, %v751_v10  ;;  %v1329_v26 = vsel %vm99_vm2, %v1327_v14, %v1328_v19  ;;  %v1338_v28 = vmax.f32 %v1320_v63, %v1328_v19  ;;  %v1928_v29 = vmax.f32 %v5414_v46, %v41_v15  ;;  %v1237_v46 = vrot.slane %v5445_v58, 3  ;;  %v4632_v58 = vld [vmem:[%s6310_s1 + $0x38] sm:$0xf] }
  0x22   :  { %4913 = vmatpush3.msk.msra.mxu0 %vm145_vm0, %v4614_v5  ;;  %4918 = vmatpush3.msk.msra.mxu1 %vm145_vm0, %v4617_v11  ;;  %v1330_v31 = vrot.slane %v1321_v21, 1  ;;  %v1331_v32 = vrot.slane %v1322_v22, 1  ;;  %v1337_v33 = vmax.f32 %v5449_v40, %v1329_v26  ;;  %v1344_v34 = vrot.slane %v1321_v21, 2 }
  0x23   :  { %4914 = vmatprep.mubr.msk.f32.mxu0 %vm5213_vm1, %v5212_v2  ;;  %4919 = vmatprep.mubr.msk.f32.mxu1 %vm5213_vm1, %v5212_v2  ;;  %v1343_v36 = vsel %vm114_vm3, %v1341_v23, %v1342_v27  ;;  %v1345_v37 = vrot.slane %v1322_v22, 2  ;;  %v1352_v38 = vmax.f32 %v1338_v28, %v1342_v27  ;;  %v1929_v45 = vmax.f32 %v5425_v50, %v42_v24  ;;  %v4626_v50 = vld [vmem:[%s6310_s1 + $0x30] sm:$0xf] }
  0x24   :  { %4922 = vmatprep.subr.mxu0 %v5212_v2  ;;  %4927 = vmatprep.subr.mxu1 %v5212_v2  ;;  %v1332_v47 = vsel %vm99_vm2, %v1330_v31, %v1331_v32  ;;  %v1351_v39 = vmax.f32 %v1337_v33, %v1343_v36  ;;  %v1340_v48 = vmax.f32 %v1322_v22, %v1331_v32 }
  0x25   :  { %4915 = vmatmul.mubr.msk.f32.vlgmr.msra.gmra.mxu0 %vm142_vm5, %v832_v16  ;;  %4920 = vmatmul.mubr.msk.f32.vlgmr.msra.gmra.mxu1 %vm142_vm5, %v913_v17  ;;  %v1339_v51 = vmax.f32 %v1321_v21, %v1332_v47  ;;  %v1346_v52 = vsel %vm114_vm3, %v1344_v34, %v1345_v37  ;;  %v1930_v53 = vmax.f32 %v5468_v8, %v71_v35  ;;  %v5586_v44 = vmax.f32 %v1352_v38, 0.0 }
  0x26   :  { %4923 = vmatpush3.msk.msra.mxu0 %vm145_vm0, %v4620_v25  ;;  %4928 = vmatpush3.msk.msra.mxu1 %vm145_vm0, %v4623_v30  ;;  %v1355_v43 = vmax.f32 %v1351_v39, 0.0  ;;  %v1354_v56 = vmax.f32 %v1340_v48, %v1345_v37  ;;  %v1931_v40 = vmax.f32 %v5473_v9, %v72_v42  ;;  %v5569_v60 = vmax.f32 %v1928_v29, %v5528_v41 }
  0x27   :  { %4924 = vmatprep.mubr.msk.f32.mxu0 %vm5213_vm1, %v5212_v2  ;;  %4929 = vmatprep.mubr.msk.f32.mxu1 %vm5213_vm1, %v5212_v2  ;;  %v1157_v61 = vsel %vm140_vm4, %v1156_v12, %v1155_v7  ;;  %v1353_v62 = vmax.f32 %v1339_v51, %v1346_v52  ;;  %v5579_v63 = vmax.f32 %v1929_v45, %v5541_v49  ;;  %v4635_v7 = vld [vmem:[%s6310_s1 + $0x3c] sm:$0xf] }
  0x28   :  { %4932 = vmatprep.subr.mxu0 %v5212_v2  ;;  %4937 = vmatprep.subr.mxu1 %v5212_v2  ;;  %v1238_v0 = vsel %vm140_vm4, %v1237_v46, %v1236_v13  ;;  %v1443_v1 = vrot.slane %v1355_v43, 2  ;;  %v5588_v3 = vmax.f32 %v1354_v56, 0.0  ;;  %v1524_v5 = vrot.slane %v1355_v43, 4 }
  0x29   :  { %4925 = vmatmul.mubr.msk.f32.vlgmr.msra.gmra.mxu0 %vm142_vm5, %v994_v18  ;;  %4930 = vmatmul.mubr.msk.f32.vlgmr.msra.gmra.mxu1 %vm142_vm5, %v1076_v20  ;;  %v1357_v4 = vmax.f32 %v1353_v62, 0.0  ;;  %v5596_v6 = vmax.f32 %v1930_v53, %v5560_v57  ;;  %v5599_v54 = vmax.f32 %v1931_v40, %v5565_v59  ;;  %v1605_v8 = vrot.slane %v1355_v43, 6 }
  0x2a   :  { %4933 = vmatpush3.msk.msra.mxu0 %vm145_vm0, %v4626_v50  ;;  %4938 = vmatpush3.msk.msra.mxu1 %vm145_vm0, %v4629_v55  ;;  %v1688_v9 = vrot.slane %v5588_v3, 7  ;;  %v1940_v10 = vrot.slane %v5569_v60, 1  ;;  %v1941_v11 = vrot.slane %v5579_v63, 1 }
  0x2b   :  { %4934 = vmatprep.mubr.msk.f32.mxu0 %vm5213_vm1, %v5212_v2  ;;  %4939 = vmatprep.mubr.msk.f32.mxu1 %vm5213_vm1, %v5212_v2  ;;  %v1363_v12 = vrot.slane %v1357_v4, 7  ;;  %v1444_v13 = vrot.slane %v1357_v4, 1  ;;  %v1525_v14 = vrot.slane %v1357_v4, 3  ;;  %v1606_v15 = vrot.slane %v1357_v4, 5 }
  0x2c   :  { %4942 = vmatprep.subr.mxu0 %v5212_v2  ;;  %4947 = vmatprep.subr.mxu1 %v5212_v2 }
  0x2d   :  { %12 = vsyncpa [#allocation3], 0  ;;  %4935 = vmatmul.mubr.msk.f32.vlgmr.msra.gmra.mxu0 %vm142_vm5, %v1157_v61  ;;  %4940 = vmatmul.mubr.msk.f32.vlgmr.msra.gmra.mxu1 %vm142_vm5, %v1238_v0  ;;  %v5617_v16 = vsel %vm140_vm4, %v1688_v9, %v5586_v44  ;;  %v1768_v17 = vrot.slane %v5586_v44, 2  ;;  %v1769_v18 = vrot.slane %v5588_v3, 1  ;;  %v1943_v19 = vrot.slane %v5596_v6, 1  ;;  %v45_v34 = vld [vmem:[%s6309_s0 + $0x90] sm:$0xff] }
  0x2e   :  { %4943 = vmatpush3.msk.msra.mxu0 %vm145_vm0, %v4632_v58  ;;  %4948 = vmatpush3.msk.msra.mxu1 %vm145_vm0, %v4635_v7  ;;  %v1364_v20 = vsel %vm140_vm4, %v1363_v12, %v1355_v43  ;;  %v1445_v21 = vsel %vm140_vm4, %v1444_v13, %v1443_v1  ;;  %v1526_v22 = vsel %vm140_vm4, %v1525_v14, %v1524_v5  ;;  %v1944_v23 = vrot.slane %v5599_v54, 1  ;;  %v4638_v24 = vld [vmem:[%s6310_s1 + $0x40] sm:$0xf]  ;;  %v4641_v25 = vld [vmem:[%s6310_s1 + $0x44] sm:$0xf]  ;;  %v5659_v38 = vld [vmem:[%s6309_s0 + $0x98] sm:$0xff] }
  0x2f   :  { %4944 = vmatprep.mubr.msk.f32.mxu0 %vm5213_vm1, %v5212_v2  ;;  %4949 = vmatprep.mubr.msk.f32.mxu1 %vm5213_vm1, %v5212_v2  ;;  %v1607_v26 = vsel %vm140_vm4, %v1606_v15, %v1605_v8  ;;  %v1942_v27 = vsel %vm99_vm2, %v1940_v10, %v1941_v11  ;;  %v1954_v28 = vrot.slane %v5569_v60, 2  ;;  %v1955_v29 = vrot.slane %v5579_v63, 2  ;;  %v5669_v39 = vld [vmem:[%s6309_s0 + $0xa0] sm:$0xff]  ;;  %v75_v48 = vld [vmem:[%s6309_s0 + $0x190] sm:$0xff]  ;;  %v4644_v50 = vld [vmem:[%s6310_s1 + $0x48] sm:$0xf] }
  0x30   :  { %4952 = vmatprep.subr.mxu0 %v5212_v2  ;;  %4957 = vmatprep.subr.mxu1 %v5212_v2  ;;  %v1945_v30 = vsel %vm99_vm2, %v1943_v19, %v1944_v23  ;;  %v1950_v31 = vmax.f32 %v5569_v60, %v1942_v27  ;;  %v1957_v32 = vrot.slane %v5596_v6, 2  ;;  %v1958_v33 = vrot.slane %v5599_v54, 2  ;;  %v4647_v51 = vld [vmem:[%s6310_s1 + $0x4c] sm:$0xf]  ;;  %v5727_v10 = vld [vmem:[%s6309_s0 + $0x1a0] sm:$0xff]  ;;  %v5781_v27 = vld [vmem:[%s6309_s0 + $0x1b8] sm:$0xff] }
  0x31   :  { %4945 = vmatmul.mubr.msk.f32.vlgmr.msra.gmra.mxu0 %vm142_vm5, %v1364_v20  ;;  %4950 = vmatmul.mubr.msk.f32.vlgmr.msra.gmra.mxu1 %vm142_vm5, %v1445_v21  ;;  %v1952_v35 = vmax.f32 %v5596_v6, %v1945_v30  ;;  %v1956_v36 = vsel %vm114_vm3, %v1954_v28, %v1955_v29  ;;  %v1951_v37 = vmax.f32 %v5579_v63, %v1941_v11  ;;  %v1849_v42 = vrot.slane %v5586_v44, 4  ;;  %v5722_v9 = vld [vmem:[%s6309_s0 + $0xa8] sm:$0xff]  ;;  %v4659_v21 = vld [vmem:[%s6310_s1 + $0x5c] sm:$0xf]  ;;  %s5214_s26 = smov [#allocation2]  }
  0x32   :  { %4953 = vmatpush3.msk.msra.mxu0 %vm145_vm0, %v4638_v24  ;;  %4958 = vmatpush3.msk.msra.mxu1 %vm145_vm0, %v4641_v25  ;;  %v1959_v45 = vsel %vm114_vm3, %v1957_v32, %v1958_v33  ;;  %v1964_v46 = vmax.f32 %v1950_v31, %v1956_v36  ;;  %v1953_v47 = vmax.f32 %v5599_v54, %v1944_v23  ;;  %v1850_v52 = vrot.slane %v5588_v3, 3  ;;  %v5739_v15 = vld [vmem:[%s6309_s0 + $0x1a8] sm:$0xff]  ;;  %s4583_s27 = sshll.u32 %s5214_s26, 4  ;;  %s4584_s27 = int_to_ptr.vmem [resolvable:$true] %s4583_s27 }
  0x33   :  { %4954 = vmatprep.mubr.msk.f32.mxu0 %vm5213_vm1, %v5212_v2  ;;  %4959 = vmatprep.mubr.msk.f32.mxu1 %vm5213_vm1, %v5212_v2  ;;  %v1966_v53 = vmax.f32 %v1952_v35, %v1959_v45  ;;  %v1965_v55 = vmax.f32 %v1951_v37, %v1955_v29  ;;  %v2541_v43 = vmax.f32 %v5528_v41, %v45_v34  ;;  %v76_v41 = vld [vmem:[%s6309_s0 + $0x198] sm:$0xff]  ;;  %v4662_v35 = vld [vmem:[%s6310_s1 + $0x60] sm:$0xf]  ;;  %v4665_v45 = vld [vmem:[%s6310_s1 + $0x64] sm:$0xf]  ;;  %p5195_p1 = scmp.lt.s32.totalorder %s4584_s27, %s4584_s27 }
  0x34   :  { %4962 = vmatprep.subr.mxu0 %v5212_v2  ;;  %4967 = vmatprep.subr.mxu1 %v5212_v2  ;;  %v1770_v56 = vsel %vm140_vm4, %v1769_v18, %v1768_v17  ;;  %v1968_v40 = vmax.f32 %v1964_v46, 0.0  ;;  %v1967_v60 = vmax.f32 %v1953_v47, %v1958_v33  ;;  %v2542_v61 = vmax.f32 %v5541_v49, %v5659_v38  ;;  %v4650_v49 = vld [vmem:[%s6310_s1 + $0x50] sm:$0xf]  ;;  %v4656_v17 = vld [vmem:[%s6310_s1 + $0x58] sm:$0xf] }
  0x35   :  { %4955 = vmatmul.mubr.msk.f32.vlgmr.msra.gmra.mxu0 %vm142_vm5, %v1526_v22  ;;  %4960 = vmatmul.mubr.msk.f32.vlgmr.msra.gmra.mxu1 %vm142_vm5, %v1607_v26  ;;  %v1970_v62 = vmax.f32 %v1966_v53, 0.0  ;;  %v5693_v63 = vmax.f32 %v1965_v55, 0.0  ;;  %v2543_v0 = vmax.f32 %v5560_v57, %v75_v48  ;;  %v5700_v1 = vmax.f32 %v2541_v43, %v5669_v39  ;;  %v4653_v57 = vld [vmem:[%s6310_s1 + $0x54] sm:$0xf] }
  0x36   :  { %4963 = vmatpush3.msk.msra.mxu0 %vm145_vm0, %v4644_v50  ;;  %4968 = vmatpush3.msk.msra.mxu1 %vm145_vm0, %v4647_v51  ;;  %v2056_v44 = vrot.slane %v1968_v40, 2  ;;  %v2137_v3 = vrot.slane %v1968_v40, 4  ;;  %v2218_v58 = vrot.slane %v1968_v40, 6  ;;  %v5707_v4 = vmax.f32 %v1967_v60, 0.0  ;;  %v79_v26 = vld [vmem:[%s6309_s0 + $0x1b0] sm:$0xff]  ;;  %v5813_v50 = vld [vmem:[%s6309_s0 + $0xc0] sm:$0xff] }
  0x37   :  { %4964 = vmatprep.mubr.msk.f32.mxu0 %vm5213_vm1, %v5212_v2  ;;  %4969 = vmatprep.mubr.msk.f32.mxu1 %vm5213_vm1, %v5212_v2  ;;  %v1976_v5 = vrot.slane %v1970_v62, 7  ;;  %v2057_v6 = vrot.slane %v1970_v62, 1  ;;  %v2138_v54 = vrot.slane %v1970_v62, 3  ;;  %v2219_v7 = vrot.slane %v1970_v62, 5  ;;  %v5818_v51 = vld [vmem:[%s6309_s0 + $0xc8] sm:$0xff]  ;;  %v5832_v62 = vld [vmem:[%s6309_s0 + $0x1c0] sm:$0xff] }
  0x38   :  { %4972 = vmatprep.subr.mxu0 %v5212_v2  ;;  %4977 = vmatprep.subr.mxu1 %v5212_v2  ;;  %v2301_v8 = vrot.slane %v5707_v4, 7  ;;  %v2544_v11 = vmax.f32 %v5565_v59, %v76_v41  ;;  %v1851_v12 = vsel %vm140_vm4, %v1850_v52, %v1849_v42  ;;  %v5744_v59 = vld [vmem:[%s6309_s0 + $0xb0] sm:$0xff]  ;;  %v2546_v22 = vmax.f32 %v2542_v61, %v5722_v9 }
  0x39   :  { %4965 = vmatmul.mubr.msk.f32.vlgmr.msra.gmra.mxu0 %vm142_vm5, %v5617_v16  ;;  %4970 = vmatmul.mubr.msk.f32.vlgmr.msra.gmra.mxu1 %vm142_vm5, %v1770_v56  ;;  %v1977_v13 = vsel %vm140_vm4, %v1976_v5, %v1968_v40  ;;  %v2058_v14 = vsel %vm140_vm4, %v2057_v6, %v2056_v44  ;;  %v5749_v16 = vld [vmem:[%s6309_s0 + $0xb8] sm:$0xff]  ;;  %v2139_v18 = vsel %vm140_vm4, %v2138_v54, %v2137_v3  ;;  %v2553_v24 = vrot.slane %v5700_v1, 1  ;;  %v4668_v44 = vld [vmem:[%s6310_s1 + $0x68] sm:$0xf]  ;;  %v4671_v3 = vld [vmem:[%s6310_s1 + $0x6c] sm:$0xf] }
  0x3a   :  { %4973 = vmatpush3.msk.msra.mxu0 %vm145_vm0, %v4650_v49  ;;  %4978 = vmatpush3.msk.msra.mxu1 %vm145_vm0, %v4653_v57  ;;  %v5758_v19 = vsel %vm140_vm4, %v2219_v7, %v2218_v58  ;;  %v5762_v20 = vsel %vm140_vm4, %v2301_v8, %v5693_v63  ;;  %v2547_v23 = vmax.f32 %v2543_v0, %v5727_v10  ;;  %v2567_v25 = vrot.slane %v5700_v1, 2 }
  0x3b   :  { %4974 = vmatprep.mubr.msk.f32.mxu0 %vm5213_vm1, %v5212_v2  ;;  %4979 = vmatprep.mubr.msk.f32.mxu1 %vm5213_vm1, %v5212_v2  ;;  %v2548_v28 = vmax.f32 %v2544_v11, %v5739_v15  ;;  %v3154_v29 = vmax.f32 %v5669_v39, %v5744_v59  ;;  %v3155_v30 = vmax.f32 %v5722_v9, %v5749_v16  ;;  %v2554_v31 = vrot.slane %v2546_v22, 1 }
  0x3c   :  { %4982 = vmatprep.subr.mxu0 %v5212_v2  ;;  %4987 = vmatprep.subr.mxu1 %v5212_v2  ;;  %v2556_v32 = vrot.slane %v2547_v23, 1  ;;  %v2568_v33 = vrot.slane %v2546_v22, 2  ;;  %v2570_v34 = vrot.slane %v2547_v23, 2  ;;  %v3156_v38 = vmax.f32 %v5727_v10, %v79_v26 }
  0x3d   :  { %4975 = vmatmul.mubr.msk.f32.vlgmr.msra.gmra.mxu0 %vm142_vm5, %v1851_v12  ;;  %4980 = vmatmul.mubr.msk.f32.vlgmr.msra.gmra.mxu1 %vm142_vm5, %v1977_v13  ;;  %v2557_v36 = vrot.slane %v2548_v28, 1  ;;  %v2571_v37 = vrot.slane %v2548_v28, 2  ;;  %v3157_v42 = vmax.f32 %v5739_v15, %v5781_v27  ;;  %v2381_v46 = vrot.slane %v5693_v63, 2  ;;  %v4674_v12 = vld [vmem:[%s6310_s1 + $0x70] sm:$0xf] }
  0x3e   :  { %4983 = vmatpush3.msk.msra.mxu0 %vm145_vm0, %v4656_v17  ;;  %4988 = vmatpush3.msk.msra.mxu1 %vm145_vm0, %v4659_v21  ;;  %v2555_v47 = vsel %vm99_vm2, %v2553_v24, %v2554_v31  ;;  %v2569_v39 = vsel %vm114_vm3, %v2567_v25, %v2568_v33  ;;  %v2564_v48 = vmax.f32 %v2546_v22, %v2554_v31  ;;  %v2382_v52 = vrot.slane %v5707_v4, 1 }
  0x3f   :  { %4984 = vmatprep.mubr.msk.f32.mxu0 %vm5213_vm1, %v5212_v2  ;;  %4989 = vmatprep.mubr.msk.f32.mxu1 %vm5213_vm1, %v5212_v2  ;;  %v2558_v53 = vsel %vm99_vm2, %v2556_v32, %v2557_v36  ;;  %v2563_v55 = vmax.f32 %v5700_v1, %v2555_v47  ;;  %v2572_v43 = vsel %vm114_vm3, %v2570_v34, %v2571_v37  ;;  %v2462_v56 = vrot.slane %v5693_v63, 4  ;;  %v5840_v1 = vld [vmem:[%s6309_s0 + $0x1c8] sm:$0xff] }
  0x40   :  { %4992 = vmatprep.subr.mxu0 %v5212_v2  ;;  %4997 = vmatprep.subr.mxu1 %v5212_v2  ;;  %v2565_v40 = vmax.f32 %v2547_v23, %v2558_v53  ;;  %v2566_v60 = vmax.f32 %v2548_v28, %v2557_v36  ;;  %v2578_v61 = vmax.f32 %v2564_v48, %v2568_v33  ;;  %v2463_v41 = vrot.slane %v5707_v4, 3  ;;  %v53_v28 = vld [vmem:[%s6309_s0 + $0xd0] sm:$0xff] }
  0x41   :  { %4985 = vmatmul.mubr.msk.f32.vlgmr.msra.gmra.mxu0 %vm142_vm5, %v2058_v14  ;;  %4990 = vmatmul.mubr.msk.f32.vlgmr.msra.gmra.mxu1 %vm142_vm5, %v2139_v18  ;;  %v2577_v0 = vmax.f32 %v2563_v55, %v2569_v39  ;;  %v5843_v63 = vmax.f32 %v3154_v29, %v5813_v50  ;;  %v5846_v49 = vmax.f32 %v3155_v30, %v5818_v51  ;;  %v4677_v14 = vld [vmem:[%s6310_s1 + $0x74] sm:$0xf]  ;;  %v4680_v29 = vld [vmem:[%s6310_s1 + $0x78] sm:$0xf]  ;;  %v4683_v30 = vld [vmem:[%s6310_s1 + $0x7c] sm:$0xf] }
  0x42   :  { %4993 = vmatpush3.msk.msra.mxu0 %vm145_vm0, %v4662_v35  ;;  %4998 = vmatpush3.msk.msra.mxu1 %vm145_vm0, %v4665_v45  ;;  %v2579_v58 = vmax.f32 %v2565_v40, %v2572_v43  ;;  %v5863_v57 = vmax.f32 %v3156_v38, %v5832_v62  ;;  %v2580_v7 = vmax.f32 %v2566_v60, %v2571_v37  ;;  %v5871_v8 = vmax.f32 %v2578_v61, 0.0  ;;  %v55_v43 = vld [vmem:[%s6309_s0 + $0xe0] sm:$0xff]  ;;  %v56_v60 = vld [vmem:[%s6309_s0 + $0xe8] sm:$0xff] }
  0x43   :  { %4994 = vmatprep.mubr.msk.f32.mxu0 %vm5213_vm1, %v5212_v2  ;;  %4999 = vmatprep.mubr.msk.f32.mxu1 %vm5213_vm1, %v5212_v2  ;;  %v5860_v4 = vmax.f32 %v2577_v0, 0.0  ;;  %v3166_v5 = vrot.slane %v5843_v63, 1  ;;  %v3167_v6 = vrot.slane %v5846_v49, 1  ;;  %v5874_v9 = vmax.f32 %v3157_v42, %v5840_v1  ;;  %v54_v42 = vld [vmem:[%s6309_s0 + $0xd8] sm:$0xff] }
  0x44   :  { %5002 = vmatprep.subr.mxu0 %v5212_v2  ;;  %5007 = vmatprep.subr.mxu1 %v5212_v2  ;;  %v2583_v54 = vmax.f32 %v2579_v58, 0.0  ;;  %v2383_v10 = vsel %vm140_vm4, %v2382_v52, %v2381_v46  ;;  %v2464_v11 = vsel %vm140_vm4, %v2463_v41, %v2462_v56  ;;  %v5899_v21 = vmax.f32 %v2580_v7, 0.0  ;;  %v4689_v56 = vld [vmem:[%s6310_s1 + $0x84] sm:$0xf]  ;;  %v4695_v7 = vld [vmem:[%s6310_s1 + $0x8c] sm:$0xf] }
  0x45   :  { %4995 = vmatmul.mubr.msk.f32.vlgmr.msra.gmra.mxu0 %vm142_vm5, %v5758_v19  ;;  %5000 = vmatmul.mubr.msk.f32.vlgmr.msra.gmra.mxu1 %vm142_vm5, %v5762_v20  ;;  %v2669_v13 = vrot.slane %v5860_v4, 2  ;;  %v2750_v16 = vrot.slane %v5860_v4, 4  ;;  %v3168_v18 = vsel %vm99_vm2, %v3166_v5, %v3167_v6  ;;  %v3169_v19 = vrot.slane %v5863_v57, 1 }
  0x46   :  { %5003 = vmatpush3.msk.msra.mxu0 %vm145_vm0, %v4668_v44  ;;  %5008 = vmatpush3.msk.msra.mxu1 %vm145_vm0, %v4671_v3  ;;  %v2589_v15 = vrot.slane %v2583_v54, 7  ;;  %v2670_v59 = vrot.slane %v2583_v54, 1  ;;  %v2751_v17 = vrot.slane %v2583_v54, 3  ;;  %v2831_v20 = vrot.slane %v5860_v4, 6  ;;  %v84_v44 = vld [vmem:[%s6309_s0 + $0x1d8] sm:$0xff] }
  0x47   :  { %5004 = vmatprep.mubr.msk.f32.mxu0 %vm5213_vm1, %v5212_v2  ;;  %5009 = vmatprep.mubr.msk.f32.mxu1 %vm5213_vm1, %v5212_v2  ;;  %v2994_v22 = vrot.slane %v5871_v8, 2  ;;  %v3170_v23 = vrot.slane %v5874_v9, 1  ;;  %v2832_v26 = vrot.slane %v2583_v54, 5  ;;  %v3180_v27 = vrot.slane %v5843_v63, 2  ;;  %v4692_v54 = vld [vmem:[%s6310_s1 + $0x88] sm:$0xf] }
  0x48   :  { %5012 = vmatprep.subr.mxu0 %v5212_v2  ;;  %5017 = vmatprep.subr.mxu1 %v5212_v2  ;;  %v2590_v24 = vsel %vm140_vm4, %v2589_v15, %v5860_v4  ;;  %v2671_v25 = vsel %vm140_vm4, %v2670_v59, %v2669_v13  ;;  %v2752_v31 = vsel %vm140_vm4, %v2751_v17, %v2750_v16  ;;  %v3181_v34 = vrot.slane %v5846_v49, 2  ;;  %v85_v13 = vld [vmem:[%s6309_s0 + $0x1e0] sm:$0xff] }
  0x49   :  { %5005 = vmatmul.mubr.msk.f32.vlgmr.msra.gmra.mxu0 %vm142_vm5, %v2383_v10  ;;  %5010 = vmatmul.mubr.msk.f32.vlgmr.msra.gmra.mxu1 %vm142_vm5, %v2464_v11  ;;  %v3171_v32 = vsel %vm99_vm2, %v3169_v19, %v3170_v23  ;;  %v3176_v33 = vmax.f32 %v5843_v63, %v3168_v18  ;;  %v3183_v36 = vrot.slane %v5863_v57, 2  ;;  %v3184_v37 = vrot.slane %v5874_v9, 2 }
  0x4a   :  { %5013 = vmatpush3.msk.msra.mxu0 %vm145_vm0, %v4674_v12  ;;  %5018 = vmatpush3.msk.msra.mxu1 %vm145_vm0, %v4677_v14  ;;  %v3178_v35 = vmax.f32 %v5863_v57, %v3171_v32  ;;  %v3177_v38 = vmax.f32 %v5846_v49, %v3167_v6  ;;  %v2914_v45 = vrot.slane %v5899_v21, 7  ;;  %v3182_v46 = vsel %vm114_vm3, %v3180_v27, %v3181_v34  ;;  %v83_v49 = vld [vmem:[%s6309_s0 + $0x1d0] sm:$0xff]  ;;  %v86_v14 = vld [vmem:[%s6309_s0 + $0x1e8] sm:$0xff] }
  0x4b   :  { %5014 = vmatprep.mubr.msk.f32.mxu0 %vm5213_vm1, %v5212_v2  ;;  %5019 = vmatprep.mubr.msk.f32.mxu1 %vm5213_vm1, %v5212_v2  ;;  %v3179_v47 = vmax.f32 %v5874_v9, %v3170_v23  ;;  %v3767_v39 = vmax.f32 %v5813_v50, %v53_v28  ;;  %v2833_v48 = vsel %vm140_vm4, %v2832_v26, %v2831_v20  ;;  %v2995_v52 = vrot.slane %v5899_v21, 1  ;;  %v4686_v50 = vld [vmem:[%s6310_s1 + $0x80] sm:$0xf]  ;;  %v4698_v20 = vld [vmem:[%s6310_s1 + $0x90] sm:$0xf] }
  0x4c   :  { %5022 = vmatprep.subr.mxu0 %v5212_v2  ;;  %5027 = vmatprep.subr.mxu1 %v5212_v2  ;;  %v3185_v53 = vsel %vm114_vm3, %v3183_v36, %v3184_v37  ;;  %v3190_v55 = vmax.f32 %v3176_v33, %v3182_v46  ;;  %v3768_v61 = vmax.f32 %v5818_v51, %v54_v42  ;;  %v3075_v41 = vrot.slane %v5871_v8, 4  ;;  %v4707_v42 = vld [vmem:[%s6310_s1 + $0x9c] sm:$0xf] }
  0x4d   :  { %5015 = vmatmul.mubr.msk.f32.vlgmr.msra.gmra.mxu0 %vm142_vm5, %v2590_v24  ;;  %5020 = vmatmul.mubr.msk.f32.vlgmr.msra.gmra.mxu1 %vm142_vm5, %v2671_v25  ;;  %v3192_v40 = vmax.f32 %v3178_v35, %v3185_v53  ;;  %v3076_v0 = vrot.slane %v5899_v21, 3  ;;  %v3193_v63 = vmax.f32 %v3179_v47, %v3184_v37  ;;  %v3191_v3 = vmax.f32 %v3177_v38, %v3181_v34  ;;  %v4701_v21 = vld [vmem:[%s6310_s1 + $0x94] sm:$0xf]  ;;  %v4704_v38 = vld [vmem:[%s6310_s1 + $0x98] sm:$0xf] }
  0x4e   :  { %5023 = vmatpush3.msk.msra.mxu0 %vm145_vm0, %v4680_v29  ;;  %5028 = vmatpush3.msk.msra.mxu1 %vm145_vm0, %v4683_v30  ;;  %v5977_v58 = vmax.f32 %v3767_v39, %v55_v43  ;;  %v2915_v4 = vsel %vm140_vm4, %v2914_v45, %v5871_v8  ;;  %v2996_v57 = vsel %vm140_vm4, %v2995_v52, %v2994_v22  ;;  %v5984_v5 = vmax.f32 %v3190_v55, 0.0 }
  0x4f   :  { %5024 = vmatprep.mubr.msk.f32.mxu0 %vm5213_vm1, %v5212_v2  ;;  %5029 = vmatprep.mubr.msk.f32.mxu1 %vm5213_vm1, %v5212_v2  ;;  %v5975_v51 = vmax.f32 %v3192_v40, 0.0  ;;  %v5986_v6 = vmax.f32 %v3768_v61, %v56_v60  ;;  %v3769_v9 = vmax.f32 %v5832_v62, %v83_v49  ;;  %v3770_v10 = vmax.f32 %v5840_v1, %v84_v44 }
  0x50   :  { %5032 = vmatprep.subr.mxu0 %v5212_v2  ;;  %5037 = vmatprep.subr.mxu1 %v5212_v2  ;;  %v3077_v11 = vsel %vm140_vm4, %v3076_v0, %v3075_v41  ;;  %v6004_v12 = vmax.f32 %v3193_v63, 0.0  ;;  %v3282_v62 = vrot.slane %v5984_v5, 2  ;;  %v3363_v1 = vrot.slane %v5984_v5, 4  ;;  %v4710_v41 = vld [vmem:[%s6310_s1 + $0xa0] sm:$0xf] }
  0x51   :  { %5025 = vmatmul.mubr.msk.f32.vlgmr.msra.gmra.mxu0 %vm142_vm5, %v2752_v31  ;;  %5030 = vmatmul.mubr.msk.f32.vlgmr.msra.gmra.mxu1 %vm142_vm5, %v2833_v48  ;;  %v3202_v8 = vrot.slane %v5975_v51, 7  ;;  %v6016_v15 = vmax.f32 %v3191_v3, 0.0  ;;  %v3779_v59 = vrot.slane %v5977_v58, 1  ;;  %v3283_v17 = vrot.slane %v5975_v51, 1  ;;  %v4713_v0 = vld [vmem:[%s6310_s1 + $0xa4] sm:$0xf] }
  0x52   :  { %5033 = vmatpush3.msk.msra.mxu0 %vm145_vm0, %v4686_v50  ;;  %5038 = vmatpush3.msk.msra.mxu1 %vm145_vm0, %v4689_v56  ;;  %v3364_v18 = vrot.slane %v5975_v51, 3  ;;  %v3780_v19 = vrot.slane %v5986_v6, 1  ;;  %v3444_v22 = vrot.slane %v5984_v5, 6  ;;  %v3773_v23 = vmax.f32 %v3769_v9, %v85_v13 }
  0x53   :  { %5034 = vmatprep.mubr.msk.f32.mxu0 %vm5213_vm1, %v5212_v2  ;;  %5039 = vmatprep.mubr.msk.f32.mxu1 %vm5213_vm1, %v5212_v2  ;;  %v3203_v16 = vsel %vm140_vm4, %v3202_v8, %v5984_v5  ;;  %v3774_v24 = vmax.f32 %v3770_v10, %v86_v14  ;;  %v3793_v25 = vrot.slane %v5977_v58, 2  ;;  %v3445_v26 = vrot.slane %v5975_v51, 5  ;;  %v4716_v5 = vld [vmem:[%s6310_s1 + $0xa8] sm:$0xf]  ;;  %v4722_v14 = vld [vmem:[%s6310_s1 + $0xb0] sm:$0xf] }
  0x54   :  { %5042 = vmatprep.subr.mxu0 %v5212_v2  ;;  %5047 = vmatprep.subr.mxu1 %v5212_v2  ;;  %v3527_v27 = vrot.slane %v6004_v12, 7  ;;  %v3781_v28 = vsel %vm99_vm2, %v3779_v59, %v3780_v19  ;;  %v3794_v29 = vrot.slane %v5986_v6, 2  ;;  %v3782_v30 = vrot.slane %v3773_v23, 1 }
  0x55   :  { %5035 = vmatmul.mubr.msk.f32.vlgmr.msra.gmra.mxu0 %vm142_vm5, %v2915_v4  ;;  %5040 = vmatmul.mubr.msk.f32.vlgmr.msra.gmra.mxu1 %vm142_vm5, %v2996_v57  ;;  %v3783_v31 = vrot.slane %v3774_v24, 1  ;;  %v3789_v32 = vmax.f32 %v5977_v58, %v3781_v28  ;;  %v3796_v33 = vrot.slane %v3773_v23, 2  ;;  %v3284_v34 = vsel %vm140_vm4, %v3283_v17, %v3282_v62  ;;  %v4725_v62 = vld [vmem:[%s6310_s1 + $0xb4] sm:$0xf]  ;;  %v4402_v28 = vld [vmem:[%s6312_s3 + $0x68] sm:$0xff] }
  0x56   :  { %5043 = vmatpush3.msk.msra.mxu0 %vm145_vm0, %v4692_v54  ;;  %5048 = vmatpush3.msk.msra.mxu1 %vm145_vm0, %v4695_v7  ;;  %v3365_v35 = vsel %vm140_vm4, %v3364_v18, %v3363_v1  ;;  %v3795_v36 = vsel %vm114_vm3, %v3793_v25, %v3794_v29  ;;  %v3797_v37 = vrot.slane %v3774_v24, 2  ;;  %v3607_v47 = vrot.slane %v6016_v15, 2  ;;  %v4728_v18 = vld [vmem:[%s6310_s1 + $0xb8] sm:$0xf] }
  0x57   :  { %5044 = vmatprep.mubr.msk.f32.mxu0 %vm5213_vm1, %v5212_v2  ;;  %5049 = vmatprep.mubr.msk.f32.mxu1 %vm5213_vm1, %v5212_v2  ;;  %v3784_v45 = vsel %vm99_vm2, %v3782_v30, %v3783_v31  ;;  %v3803_v46 = vmax.f32 %v3789_v32, %v3795_v36  ;;  %v3608_v39 = vrot.slane %v6004_v12, 1  ;;  %v3688_v53 = vrot.slane %v6016_v15, 4  ;;  %v4400_v30 = vld [vmem:[%s6312_s3 + $0x58] sm:$0xff]  ;;  %v4398_v32 = vld [vmem:[%s6312_s3 + $0x48] sm:$0xff] }
  0x58   :  { %5052 = vmatprep.subr.mxu0 %v5212_v2  ;;  %5057 = vmatprep.subr.mxu1 %v5212_v2  ;;  %v3791_v48 = vmax.f32 %v3773_v23, %v3784_v45  ;;  %v3798_v52 = vsel %vm114_vm3, %v3796_v33, %v3797_v37  ;;  %v3689_v55 = vrot.slane %v6004_v12, 3  ;;  %v3790_v43 = vmax.f32 %v5986_v6, %v3780_v19  ;;  %v4719_v6 = vld [vmem:[%s6310_s1 + $0xac] sm:$0xf]  ;;  %v4731_v19 = vld [vmem:[%s6310_s1 + $0xbc] sm:$0xf]  ;;  %v4397_v33 = vld [vmem:[%s6312_s3 + $0x40] sm:$0xff] }
  0x59   :  { %5045 = vmatmul.mubr.msk.f32.vlgmr.msra.gmra.mxu0 %vm142_vm5, %v3077_v11  ;;  %5050 = vmatmul.mubr.msk.f32.vlgmr.msra.gmra.mxu1 %vm142_vm5, %v3203_v16  ;;  %v3792_v50 = vmax.f32 %v3774_v24, %v3783_v31  ;;  %v3446_v56 = vsel %vm140_vm4, %v3445_v26, %v3444_v22  ;;  %v3528_v40 = vsel %vm140_vm4, %v3527_v27, %v6016_v15  ;;  %v3807_v61 = vmax.f32 %v3803_v46, 0.0  ;;  %v4734_v24 = vld [vmem:[%s6310_s1 + $0xc0] sm:$0xf]  ;;  %v4404_v26 = vld [vmem:[%s6312_s3 + $0x78] sm:$0xff]  ;;  %v4403_v27 = vld [vmem:[%s6312_s3 + $0x70] sm:$0xff] }
  0x5a   :  { %5053 = vmatpush3.msk.msra.mxu0 %vm145_vm0, %v4698_v20  ;;  %5058 = vmatpush3.msk.msra.mxu1 %vm145_vm0, %v4701_v21  ;;  %v3805_v60 = vmax.f32 %v3791_v48, %v3798_v52  ;;  %v3609_v49 = vsel %vm140_vm4, %v3608_v39, %v3607_v47  ;;  %v3804_v44 = vmax.f32 %v3790_v43, %v3794_v29  ;;  %v4401_v29 = vld [vmem:[%s6312_s3 + $0x60] sm:$0xff]  ;;  %v4399_v31 = vld [vmem:[%s6312_s3 + $0x50] sm:$0xff]  ;;  %v4394_v36 = vld [vmem:[%s6312_s3 + $0x28] sm:$0xff] }
  0x5b   :  { %5054 = vmatprep.mubr.msk.f32.mxu0 %vm5213_vm1, %v5212_v2  ;;  %5059 = vmatprep.mubr.msk.f32.mxu1 %vm5213_vm1, %v5212_v2  ;;  %v3806_v51 = vmax.f32 %v3792_v50, %v3797_v37  ;;  %v3690_v3 = vsel %vm140_vm4, %v3689_v55, %v3688_v53  ;;  %v3895_v4 = vrot.slane %v3807_v61, 2  ;;  %v3976_v54 = vrot.slane %v3807_v61, 4  ;;  %v4393_v37 = vld [vmem:[%s6312_s3 + $0x20] sm:$0xff]  ;;  %v4390_v45 = vld [vmem:[%s6312_s3 + $0x8] sm:$0xff]  ;;  %v4498_v47 = vld [vmem:[%s6314_s5 + $0x78] sm:$0xff] }
  0x5c   :  { %5062 = vmatprep.subr.mxu0 %v5212_v2  ;;  %5067 = vmatprep.subr.mxu1 %v5212_v2  ;;  %v3809_v63 = vmax.f32 %v3805_v60, 0.0  ;;  %v4057_v7 = vrot.slane %v3807_v61, 6  ;;  %v3808_v8 = vmax.f32 %v3804_v44, 0.0  ;;  %v4389_v46 = vld [vmem:[%s6312_s3] sm:$0xff]  ;;  %v4497_v39 = vld [vmem:[%s6314_s5 + $0x70] sm:$0xff]  ;;  %v4496_v48 = vld [vmem:[%s6314_s5 + $0x68] sm:$0xff] }
  0x5d   :  { %5055 = vmatmul.mubr.msk.f32.vlgmr.msra.gmra.mxu0 %vm142_vm5, %v3284_v34  ;;  %5060 = vmatmul.mubr.msk.f32.vlgmr.msra.gmra.mxu1 %vm142_vm5, %v3365_v35  ;;  %v3810_v9 = vmax.f32 %v3806_v51, 0.0  ;;  %v4396_v34 = vld [vmem:[%s6312_s3 + $0x38] sm:$0xff]  ;;  %v4395_v35 = vld [vmem:[%s6312_s3 + $0x30] sm:$0xff]  ;;  %v4495_v52 = vld [vmem:[%s6314_s5 + $0x60] sm:$0xff] }
  0x5e   :  { %5063 = vmatpush3.msk.msra.mxu0 %vm145_vm0, %v4704_v38  ;;  %5068 = vmatpush3.msk.msra.mxu1 %vm145_vm0, %v4707_v42  ;;  %v3815_v58 = vrot.slane %v3809_v63, 7  ;;  %v3896_v57 = vrot.slane %v3809_v63, 1  ;;  %v3977_v12 = vrot.slane %v3809_v63, 3  ;;  %v4058_v13 = vrot.slane %v3809_v63, 5  ;;  %v4392_v38 = vld [vmem:[%s6312_s3 + $0x18] sm:$0xff]  ;;  %v4391_v42 = vld [vmem:[%s6312_s3 + $0x10] sm:$0xff] }
  0x5f   :  { %5064 = vmatprep.mubr.msk.f32.mxu0 %vm5213_vm1, %v5212_v2  ;;  %5069 = vmatprep.mubr.msk.f32.mxu1 %vm5213_vm1, %v5212_v2  ;;  %v4220_v1 = vrot.slane %v3808_v8, 2  ;;  %v4140_v16 = vrot.slane %v3810_v9, 7  ;;  %v4221_v17 = vrot.slane %v3810_v9, 1  ;;  %v4301_v22 = vrot.slane %v3808_v8, 4  ;;  %v4494_v53 = vld [vmem:[%s6314_s5 + $0x58] sm:$0xff]  ;;  %v4493_v55 = vld [vmem:[%s6314_s5 + $0x50] sm:$0xff] }
  0x60   :  { %5072 = vmatprep.subr.mxu0 %v5212_v2  ;;  %5077 = vmatprep.subr.mxu1 %v5212_v2  ;;  %v3816_v10 = vsel %vm140_vm4, %v3815_v58, %v3807_v61  ;;  %v3897_v11 = vsel %vm140_vm4, %v3896_v57, %v3895_v4  ;;  %v3978_v15 = vsel %vm140_vm4, %v3977_v12, %v3976_v54  ;;  %v4302_v23 = vrot.slane %v3810_v9, 3  ;;  %v4492_v43 = vld [vmem:[%s6314_s5 + $0x48] sm:$0xff]  ;;  %v4491_v50 = vld [vmem:[%s6314_s5 + $0x40] sm:$0xff] }
  0x61   :  { %5065 = vmatmul.mubr.msk.f32.vlgmr.msra.gmra.mxu0 %vm142_vm5, %v3446_v56  ;;  %5070 = vmatmul.mubr.msk.f32.vlgmr.msra.gmra.mxu1 %vm142_vm5, %v3528_v40  ;;  %v4059_v59 = vsel %vm140_vm4, %v4058_v13, %v4057_v7  ;;  %v4141_v20 = vsel %vm140_vm4, %v4140_v16, %v3808_v8  ;;  %v4222_v21 = vsel %vm140_vm4, %v4221_v17, %v4220_v1  ;;  %v4490_v56 = vld [vmem:[%s6314_s5 + $0x38] sm:$0xff]  ;;  %v4489_v40 = vld [vmem:[%s6314_s5 + $0x30] sm:$0xff]  ;;  %v4488_v60 = vld [vmem:[%s6314_s5 + $0x28] sm:$0xff] }
  0x62   :  { %5073 = vmatpush3.msk.msra.mxu0 %vm145_vm0, %v4710_v41  ;;  %5078 = vmatpush3.msk.msra.mxu1 %vm145_vm0, %v4713_v0  ;;  %v4303_v25 = vsel %vm140_vm4, %v4302_v23, %v4301_v22  ;;  %v4487_v61 = vld [vmem:[%s6314_s5 + $0x20] sm:$0xff]  ;;  %v4486_v41 = vld [vmem:[%s6314_s5 + $0x18] sm:$0xff] }
  0x63   :  { %5074 = vmatprep.mubr.msk.f32.mxu0 %vm5213_vm1, %v5212_v2  ;;  %5079 = vmatprep.mubr.msk.f32.mxu1 %vm5213_vm1, %v5212_v2 }
  0x64   :  { %5082 = vmatprep.subr.mxu0 %v5212_v2  ;;  %5087 = vmatprep.subr.mxu1 %v5212_v2 }
  0x65   :  { %5075 = vmatmul.mubr.msk.f32.vlgmr.msra.gmra.mxu0 %vm142_vm5, %v3609_v49  ;;  %5080 = vmatmul.mubr.msk.f32.vlgmr.msra.gmra.mxu1 %vm142_vm5, %v3690_v3 }
  0x66   :  { %5083 = vmatpush3.msk.msra.mxu0 %vm145_vm0, %v4716_v5  ;;  %5088 = vmatpush3.msk.msra.mxu1 %vm145_vm0, %v4719_v6 }
  0x67   :  { %5084 = vmatprep.mubr.msk.f32.mxu0 %vm5213_vm1, %v5212_v2  ;;  %5089 = vmatprep.mubr.msk.f32.mxu1 %vm5213_vm1, %v5212_v2 }
  0x68   :  { %5092 = vmatprep.subr.mxu0 %v5212_v2  ;;  %5097 = vmatprep.subr.mxu1 %v5212_v2 }
  0x69   :  { %5085 = vmatmul.mubr.msk.f32.vlgmr.msra.gmra.mxu0 %vm142_vm5, %v3816_v10  ;;  %5090 = vmatmul.mubr.msk.f32.vlgmr.msra.gmra.mxu1 %vm142_vm5, %v3897_v11 }
  0x6a   :  { %5093 = vmatpush3.msk.msra.mxu0 %vm145_vm0, %v4722_v14  ;;  %5098 = vmatpush3.msk.msra.mxu1 %vm145_vm0, %v4725_v62 }
  0x6b   :  { %5094 = vmatprep.mubr.msk.f32.mxu0 %vm5213_vm1, %v5212_v2  ;;  %5099 = vmatprep.mubr.msk.f32.mxu1 %vm5213_vm1, %v5212_v2 }
  0x6c   :  { %5102 = vmatprep.subr.mxu0 %v5212_v2  ;;  %5107 = vmatprep.subr.mxu1 %v5212_v2 }
  0x6d   :  { %5095 = vmatmul.mubr.msk.f32.vlgmr.msra.gmra.mxu0 %vm142_vm5, %v3978_v15  ;;  %5100 = vmatmul.mubr.msk.f32.vlgmr.msra.gmra.mxu1 %vm142_vm5, %v4059_v59 }
  0x6e   :  { %5103 = vmatpush3.msk.msra.mxu0 %vm145_vm0, %v4728_v18  ;;  %5108 = vmatpush3.msk.msra.mxu1 %vm145_vm0, %v4731_v19 }
  0x6f   :  { %5104 = vmatprep.mubr.msk.f32.mxu0 %vm5213_vm1, %v5212_v2  ;;  %5109 = vmatprep.mubr.msk.f32.mxu1 %vm5213_vm1, %v5212_v2 }
  0x70   :  { %5112 = vmatprep.subr.mxu0 %v5212_v2  ;;  %5117 = vmatprep.subr.mxu1 %v5212_v2 }
  0x71   :  { %5105 = vmatmul.mubr.msk.f32.vlgmr.msra.gmra.mxu0 %vm142_vm5, %v4141_v20  ;;  %5110 = vmatmul.mubr.msk.f32.vlgmr.msra.gmra.mxu1 %vm142_vm5, %v4222_v21 }
  0x72   :  { %5113 = vmatpush3.msk.msra.mxu0 %vm145_vm0, %v4734_v24  ;;  %5114 = vmatprep.mubr.msk.f32.mxu0 %vm5213_vm1, %v5212_v2 }
  0x73   :  { %5149 = vmatprep.mubr.msk.f32.mxu1 %vm5213_vm1, %v5212_v2  ;;  %5152 = vmatprep.subr.mxu0 %v5212_v2 }
  0x74   :  { %5118 = vmatpush3.msra.mxu1 %v4404_v26 }
  0x75   :  { %5115 = vmatmul.mubr.msk.f32.vlgmr.msra.gmra.mxu0 %vm142_vm5, %v4303_v25  ;;  %5119 = vmatprep.subr.mxu1 %v5212_v2 }
  0x76   :  { %5184 = vmatprep.mubr.msk.f32.mxu0 %vm5213_vm1, %v5212_v2  ;;  %5120 = vmatpush3.msra.mxu1 %v4403_v27 }
  0x77   :  { %5121 = vmatprep.subr.mxu1 %v5212_v2  ;;  %5153 = vmatpush3.msra.mxu0 %v4498_v47 }
  0x78   :  { %5122 = vmatpush3.msra.mxu1 %v4402_v28  ;;  %5154 = vmatprep.subr.mxu0 %v5212_v2 }
  0x79   :  { %5123 = vmatprep.subr.mxu1 %v5212_v2  ;;  %5155 = vmatpush3.msra.mxu0 %v4497_v39 }
  0x7a   :  { %5124 = vmatpush3.msra.mxu1 %v4401_v29  ;;  %5156 = vmatprep.subr.mxu0 %v5212_v2 }
  0x7b   :  { %5125 = vmatprep.subr.mxu1 %v5212_v2  ;;  %5157 = vmatpush3.msra.mxu0 %v4496_v48 }
  0x7c   :  { %5126 = vmatpush3.msra.mxu1 %v4400_v30  ;;  %5158 = vmatprep.subr.mxu0 %v5212_v2 }
  0x7d   :  { %5127 = vmatprep.subr.mxu1 %v5212_v2  ;;  %5159 = vmatpush3.msra.mxu0 %v4495_v52 }
  0x7e   :  { %5128 = vmatpush3.msra.mxu1 %v4399_v31  ;;  %5160 = vmatprep.subr.mxu0 %v5212_v2 }
  0x7f   :  { %5129 = vmatprep.subr.mxu1 %v5212_v2  ;;  %5161 = vmatpush3.msra.mxu0 %v4494_v53 }
  0x80   :  { %5130 = vmatpush3.msra.mxu1 %v4398_v32  ;;  %5162 = vmatprep.subr.mxu0 %v5212_v2 }
  0x81   :  { %5131 = vmatprep.subr.mxu1 %v5212_v2  ;;  %5163 = vmatpush3.msra.mxu0 %v4493_v55 }
  0x82   :  { %5132 = vmatpush3.msra.mxu1 %v4397_v33  ;;  %5164 = vmatprep.subr.mxu0 %v5212_v2 }
  0x83   :  { %5133 = vmatprep.subr.mxu1 %v5212_v2  ;;  %5165 = vmatpush3.msra.mxu0 %v4492_v43 }
  0x84   :  { %5134 = vmatpush3.msra.mxu1 %v4396_v34  ;;  %5166 = vmatprep.subr.mxu0 %v5212_v2 }
  0x85   :  { %5135 = vmatprep.subr.mxu1 %v5212_v2  ;;  %5167 = vmatpush3.msra.mxu0 %v4491_v50 }
  0x86   :  { %5136 = vmatpush3.msra.mxu1 %v4395_v35  ;;  %5168 = vmatprep.subr.mxu0 %v5212_v2 }
  0x87   :  { %5137 = vmatprep.subr.mxu1 %v5212_v2  ;;  %5169 = vmatpush3.msra.mxu0 %v4490_v56 }
  0x88   :  { %5138 = vmatpush3.msra.mxu1 %v4394_v36  ;;  %5170 = vmatprep.subr.mxu0 %v5212_v2 }
  0x89   :  { %5139 = vmatprep.subr.mxu1 %v5212_v2  ;;  %5171 = vmatpush3.msra.mxu0 %v4489_v40 }
  0x8a   :  { %5140 = vmatpush3.msra.mxu1 %v4393_v37  ;;  %5172 = vmatprep.subr.mxu0 %v5212_v2 }
  0x8b   :  { %5141 = vmatprep.subr.mxu1 %v5212_v2  ;;  %5173 = vmatpush3.msra.mxu0 %v4488_v60 }
  0x8c   :  { %5142 = vmatpush3.msra.mxu1 %v4392_v38  ;;  %5174 = vmatprep.subr.mxu0 %v5212_v2 }
  0x8d   :  { %5143 = vmatprep.subr.mxu1 %v5212_v2  ;;  %5175 = vmatpush3.msra.mxu0 %v4487_v61 }
  0x8e   :  { %5144 = vmatpush3.msra.mxu1 %v4391_v42  ;;  %5176 = vmatprep.subr.mxu0 %v5212_v2 }
  0x8f   :  { %5145 = vmatprep.subr.mxu1 %v5212_v2  ;;  %5177 = vmatpush3.msra.mxu0 %v4486_v41 }
  0x90   :  { %5146 = vmatpush3.msra.mxu1 %v4390_v45  ;;  %5178 = vmatprep.subr.mxu0 %v5212_v2 }
  0x91   :  { %5147 = vmatprep.subr.mxu1 %v5212_v2 }
  0x92   :  { %5148 = vmatpush3.msra.mxu1 %v4389_v46 }
  0xd5   :  { %v215_v0 = vpop.f32.mrf.mxu0  ;;  %v292_v63 = vpop.f32.mrf.mxu1 }
  0xd6   :  { %v293_v51 = vadd.f32 %v292_v63, %v215_v0 }
  0xd7   :  { %v4876_v49 = vpop.f32.mrf.mxu0  ;;  %v4881_v44 = vpop.f32.mrf.mxu1 }
  0xd9   :  { %v372_v3 = vpop.f32.mrf.mxu0  ;;  %v453_v58 = vpop.f32.mrf.mxu1 }
  0xda   :  { %v376_v4 = vadd.f32 %v372_v3, %v293_v51 }
  0xdb   :  { %v4886_v57 = vpop.f32.mrf.mxu0  ;;  %v4891_v5 = vpop.f32.mrf.mxu1 }
  0xdc   :  { %v457_v6 = vadd.f32 %v453_v58, %v376_v4 }
  0xdd   :  { %v535_v54 = vpop.f32.mrf.mxu0  ;;  %v616_v7 = vpop.f32.mrf.mxu1 }
  0xde   :  { %v539_v8 = vadd.f32 %v535_v54, %v457_v6 }
  0xdf   :  { %v4896_v9 = vpop.f32.mrf.mxu0  ;;  %v4901_v10 = vpop.f32.mrf.mxu1 }
  0xe0   :  { %v620_v11 = vadd.f32 %v616_v7, %v539_v8 }
  0xe1   :  { %v697_v12 = vpop.f32.mrf.mxu0  ;;  %v823_v13 = vpop.f32.mrf.mxu1 }
  0xe2   :  { %v701_v14 = vadd.f32 %v697_v12, %v620_v11 }
  0xe3   :  { %v4906_v62 = vpop.f32.mrf.mxu0  ;;  %v4911_v1 = vpop.f32.mrf.mxu1 }
  0xe4   :  { %v827_v15 = vadd.f32 %v823_v13, %v701_v14 }
  0xe5   :  { %v904_v59 = vpop.f32.mrf.mxu0  ;;  %v985_v16 = vpop.f32.mrf.mxu1 }
  0xe6   :  { %v908_v17 = vadd.f32 %v904_v59, %v827_v15 }
  0xe7   :  { %v4916_v18 = vpop.f32.mrf.mxu0  ;;  %v4921_v19 = vpop.f32.mrf.mxu1 }
  0xe8   :  { %v989_v20 = vadd.f32 %v985_v16, %v908_v17 }
  0xe9   :  { %v1066_v21 = vpop.f32.mrf.mxu0  ;;  %v1148_v22 = vpop.f32.mrf.mxu1 }
  0xea   :  { %v1070_v23 = vadd.f32 %v1066_v21, %v989_v20 }
  0xeb   :  { %v4926_v24 = vpop.f32.mrf.mxu0  ;;  %v4931_v25 = vpop.f32.mrf.mxu1 }
  0xec   :  { %v1152_v26 = vadd.f32 %v1148_v22, %v1070_v23 }
  0xed   :  { %v1229_v27 = vpop.f32.mrf.mxu0  ;;  %v1310_v28 = vpop.f32.mrf.mxu1 }
  0xee   :  { %v1233_v29 = vadd.f32 %v1229_v27, %v1152_v26 }
  0xef   :  { %v4936_v30 = vpop.f32.mrf.mxu0  ;;  %v4941_v31 = vpop.f32.mrf.mxu1 }
  0xf0   :  { %v1314_v32 = vadd.f32 %v1310_v28, %v1233_v29 }
  0xf1   :  { %v1436_v33 = vpop.f32.mrf.mxu0  ;;  %v1517_v34 = vpop.f32.mrf.mxu1 }
  0xf2   :  { %v1440_v35 = vadd.f32 %v1436_v33, %v1314_v32 }
  0xf3   :  { %v4946_v36 = vpop.f32.mrf.mxu0  ;;  %v4951_v37 = vpop.f32.mrf.mxu1 }
  0xf4   :  { %v1521_v38 = vadd.f32 %v1517_v34, %v1440_v35 }
  0xf5   :  { %v1598_v42 = vpop.f32.mrf.mxu0  ;;  %v1679_v45 = vpop.f32.mrf.mxu1 }
  0xf6   :  { %v1602_v46 = vadd.f32 %v1598_v42, %v1521_v38 }
  0xf7   :  { %v4956_v47 = vpop.f32.mrf.mxu0  ;;  %v4961_v39 = vpop.f32.mrf.mxu1 }
  0xf8   :  { %v1683_v48 = vadd.f32 %v1679_v45, %v1602_v46 }
  0xf9   :  { %v1761_v52 = vpop.f32.mrf.mxu0  ;;  %v1842_v53 = vpop.f32.mrf.mxu1 }
  0xfa   :  { %v1765_v55 = vadd.f32 %v1761_v52, %v1683_v48 }
  0xfb   :  { %v4966_v43 = vpop.f32.mrf.mxu0  ;;  %v4971_v50 = vpop.f32.mrf.mxu1 }
  0xfc   :  { %v1846_v56 = vadd.f32 %v1842_v53, %v1765_v55 }
  0xfd   :  { %v1923_v40 = vpop.f32.mrf.mxu0  ;;  %v2049_v60 = vpop.f32.mrf.mxu1 }
  0xfe   :  { %v1927_v61 = vadd.f32 %v1923_v40, %v1846_v56 }
  0xff   :  { %v4976_v41 = vpop.f32.mrf.mxu0  ;;  %v4981_v0 = vpop.f32.mrf.mxu1 }
 0x100   :  { %v2053_v63 = vadd.f32 %v2049_v60, %v1927_v61 }
 0x101   :  { %v2130_v49 = vpop.f32.mrf.mxu0  ;;  %v2211_v44 = vpop.f32.mrf.mxu1 }
 0x102   :  { %v2134_v51 = vadd.f32 %v2130_v49, %v2053_v63 }
 0x103   :  { %v4986_v3 = vpop.f32.mrf.mxu0  ;;  %v4991_v58 = vpop.f32.mrf.mxu1 }
 0x104   :  { %v2215_v4 = vadd.f32 %v2211_v44, %v2134_v51 }
 0x105   :  { %v2292_v57 = vpop.f32.mrf.mxu0  ;;  %v2374_v5 = vpop.f32.mrf.mxu1 }
 0x106   :  { %v2296_v6 = vadd.f32 %v2292_v57, %v2215_v4 }
 0x107   :  { %v4996_v54 = vpop.f32.mrf.mxu0  ;;  %v5001_v7 = vpop.f32.mrf.mxu1 }
 0x108   :  { %v2378_v8 = vadd.f32 %v2374_v5, %v2296_v6 }
 0x109   :  { %v2455_v9 = vpop.f32.mrf.mxu0  ;;  %v2536_v10 = vpop.f32.mrf.mxu1 }
 0x10a   :  { %v2459_v11 = vadd.f32 %v2455_v9, %v2378_v8 }
 0x10b   :  { %v5006_v12 = vpop.f32.mrf.mxu0  ;;  %v5011_v13 = vpop.f32.mrf.mxu1 }
 0x10c   :  { %v2540_v14 = vadd.f32 %v2536_v10, %v2459_v11  ;;  %v4737_v13 = vld [vmem:[%s6311_s2] ss:$0 sm:$0xff] }
 0x10d   :  { %v2662_v62 = vpop.f32.mrf.mxu0  ;;  %v2743_v1 = vpop.f32.mrf.mxu1 }
 0x10e   :  { %v2666_v15 = vadd.f32 %v2662_v62, %v2540_v14 }
 0x10f   :  { %v5016_v59 = vpop.f32.mrf.mxu0  ;;  %v5021_v16 = vpop.f32.mrf.mxu1 }
 0x110   :  { %v2747_v17 = vadd.f32 %v2743_v1, %v2666_v15  ;;  %v4485_v59 = vld [vmem:[%s6314_s5 + $0x10] sm:$0xff]  ;;  %v4484_v16 = vld [vmem:[%s6314_s5 + $0x8] sm:$0xff] }
 0x111   :  { %v2824_v18 = vpop.f32.mrf.mxu0  ;;  %v2905_v19 = vpop.f32.mrf.mxu1  ;;  %5179 = vmatpush3.msra.mxu0 %v4485_v59 }
 0x112   :  { %v2828_v20 = vadd.f32 %v2824_v18, %v2747_v17  ;;  %5180 = vmatprep.subr.mxu0 %v5212_v2  ;;  %v4483_v17 = vld [vmem:[%s6314_s5] sm:$0xff]  ;;  %s5190_s5 = scalar_lea.vmem %s4584_s27, 32 }
 0x113   :  { %v5026_v21 = vpop.f32.mrf.mxu0  ;;  %v5031_v22 = vpop.f32.mrf.mxu1  ;;  %5181 = vmatpush3.msra.mxu0 %v4484_v16  ;;  %v4738_v18 = vld [vmem:[%s6313_s4] ss:$0 sm:$0xff]  ;;  %p5191_p0 = scmp.ne.s32.totalorder %s4584_s27, %s5190_s5  ;;  %p5196_p2 = scmp.lt.s32.totalorder %s5190_s5, %s5190_s5 }
 0x114   :  { %v2909_v23 = vadd.f32 %v2905_v19, %v2828_v20  ;;  %5182 = vmatprep.subr.mxu0 %v5212_v2 }
 0x115   :  { %v2987_v24 = vpop.f32.mrf.mxu0  ;;  %v3068_v25 = vpop.f32.mrf.mxu1  ;;  %5183 = vmatpush3.msra.mxu0 %v4483_v17  ;;  %p5197_p3 = por %p5196_p2, %p5195_p1 }
 0x116   :  { %v2991_v26 = vadd.f32 %v2987_v24, %v2909_v23  ;;  %v4739_v23 = vld [vmem:[%s6315_s6] ss:$0 sm:$0xff] }
 0x117   :  { %v5036_v27 = vpop.f32.mrf.mxu0  ;;  %v5041_v28 = vpop.f32.mrf.mxu1  ;;  %p5198_p4 = pnand %p5197_p3, %p5191_p0 }
 0x118   :  { %v3072_v29 = vadd.f32 %v3068_v25, %v2991_v26 }
 0x119   :  { %v3149_v30 = vpop.f32.mrf.mxu0  ;;  %v3275_v31 = vpop.f32.mrf.mxu1 }
 0x11a   :  { %v3153_v32 = vadd.f32 %v3149_v30, %v3072_v29 }
 0x11b   :  { %v5046_v33 = vpop.f32.mrf.mxu0  ;;  %v5051_v34 = vpop.f32.mrf.mxu1 }
 0x11c   :  { %v3279_v35 = vadd.f32 %v3275_v31, %v3153_v32 }
 0x11d   :  { %v3356_v36 = vpop.f32.mrf.mxu0  ;;  %v3437_v37 = vpop.f32.mrf.mxu1 }
 0x11e   :  { %v3360_v38 = vadd.f32 %v3356_v36, %v3279_v35 }
 0x11f   :  { %v5056_v42 = vpop.f32.mrf.mxu0  ;;  %v5061_v45 = vpop.f32.mrf.mxu1 }
 0x120   :  { %v3441_v46 = vadd.f32 %v3437_v37, %v3360_v38 }
 0x121   :  { %v3518_v47 = vpop.f32.mrf.mxu0  ;;  %v3600_v39 = vpop.f32.mrf.mxu1 }
 0x122   :  { %v3522_v48 = vadd.f32 %v3518_v47, %v3441_v46 }
 0x123   :  { %v5066_v52 = vpop.f32.mrf.mxu0  ;;  %v5071_v53 = vpop.f32.mrf.mxu1 }
 0x124   :  { %v3604_v55 = vadd.f32 %v3600_v39, %v3522_v48 }
 0x125   :  { %v3681_v43 = vpop.f32.mrf.mxu0  ;;  %v3762_v50 = vpop.f32.mrf.mxu1 }
 0x126   :  { %v3685_v56 = vadd.f32 %v3681_v43, %v3604_v55 }
 0x127   :  { %v5076_v40 = vpop.f32.mrf.mxu0  ;;  %v5081_v60 = vpop.f32.mrf.mxu1 }
 0x128   :  { %v3766_v61 = vadd.f32 %v3762_v50, %v3685_v56 }
 0x129   :  { %v3888_v41 = vpop.f32.mrf.mxu0  ;;  %v3969_v0 = vpop.f32.mrf.mxu1 }
 0x12a   :  { %v3892_v63 = vadd.f32 %v3888_v41, %v3766_v61 }
 0x12b   :  { %v5086_v49 = vpop.f32.mrf.mxu0  ;;  %v5091_v44 = vpop.f32.mrf.mxu1 }
 0x12c   :  { %v3973_v51 = vadd.f32 %v3969_v0, %v3892_v63 }
 0x12d   :  { %v4050_v3 = vpop.f32.mrf.mxu0  ;;  %v4131_v58 = vpop.f32.mrf.mxu1 }
 0x12e   :  { %v4054_v4 = vadd.f32 %v4050_v3, %v3973_v51 }
 0x12f   :  { %v5096_v57 = vpop.f32.mrf.mxu0  ;;  %v5101_v5 = vpop.f32.mrf.mxu1 }
 0x130   :  { %v4135_v6 = vadd.f32 %v4131_v58, %v4054_v4 }
 0x131   :  { %v4213_v54 = vpop.f32.mrf.mxu0  ;;  %v4294_v7 = vpop.f32.mrf.mxu1 }
 0x132   :  { %v4217_v8 = vadd.f32 %v4213_v54, %v4135_v6 }
 0x133   :  { %v5106_v9 = vpop.f32.mrf.mxu0  ;;  %v5111_v10 = vpop.f32.mrf.mxu1 }
 0x134   :  { %v4298_v11 = vadd.f32 %v4294_v7, %v4217_v8 }
 0x135   :  { %v4375_v12 = vpop.f32.mrf.mxu0 }
 0x136   :  { %v4379_v14 = vadd.f32 %v4375_v12, %v4298_v11 }
 0x137   :  { %v5116_v62 = vpop.f32.mrf.mxu0 }
 0x138   :  { %v4387_v1 = vadd.f32 %v4737_v13, %v4379_v14 }
 0x13a   :  { %v4388_v15 = vmax.f32 %v4387_v1, 0.0 }
 0x13c   :  { %5150 = vmatmul.mubr.f32.vlgmr.msra.gmra.mxu1 %v4388_v15 }
 0x1fc   :  { %v4478_v19 = vpop.f32.mrf.mxu1 }
 0x1fd   :  { %v4479_v20 = vadd.f32 %v4738_v18, %v4478_v19 }
 0x1fe   :  { %v5151_v21 = vpop.f32.mrf.mxu1 }
 0x1ff   :  { %v4482_v22 = vmax.f32 %v4479_v20, 0.0 }
 0x201   :  { %5185 = vmatmul.mubr.f32.vlgmr.msra.gmra.mxu0 %v4482_v22 }
 0x2c1   :  { %v4572_v2 = vpop.f32.mrf.mxu0 }
 0x2c2   :  { %v4573_v24 = vadd.f32 %v4739_v23, %v4572_v2 }
 0x2c3   :  { %v5186_v25 = vpop.f32.mrf.mxu0 }
 0x2c4   :  { %4576 = vst [vmem:[#allocation2] sm:$0x3] %v4573_v24 }
 0x2c5   :  { %5201 = shalt.err (!%p5198_p4)
}
 0x2c6   :  { %4586 = dma.vmem_to_hbm [thread:$0]  %s4584_s27, 32, %s6316_s7, [#allocation3]  }
 0x2c7   :  { %5210 = dma.done.wait [#allocation3], 32  }
 0x2c8   :  { %5211 = vsyncadd [#allocation3], 4294967264 }
 0x2c9   :  { %4590 = vsyncpa [#allocation3], 1 }

</bundles_post_ra>
